<compile_context>
chip_gen: v6e
topology: v6e:2x2x1
jax: 0.10.0
libtpu: 0.0.40
codegen_flags: <defaults>
</compile_context>

<pallas_src>
import jax
import jax.numpy as jnp
from jax.experimental import pallas as pl
from jax.experimental.pallas import tpu as pltpu


# ----------------------------------------------------------------------------
# Kernel
# ----------------------------------------------------------------------------
def _sigmoid_gate_kernel(x_ref, gate_ref, o_ref):
    # x_ref:    (block_rows, block_hw) tile of the feature map
    # gate_ref: (block_rows, 1)        per-channel gate logits
    # Sigmoid of the tiny gate in f32 (EUP); multiply in the feature map's
    # native dtype so bf16 inputs stay bf16 on v6e/v7x (no-op cast for f32).
    gate = jax.nn.sigmoid(gate_ref[...].astype(jnp.float32))
    x = x_ref[...]
    o_ref[...] = (x * gate.astype(x.dtype)).astype(o_ref.dtype)


# ----------------------------------------------------------------------------
# Hardware / layout helpers
# ----------------------------------------------------------------------------
def _round_up(x, m):
    return ((x + m - 1) // m) * m


def _sublane_pack(dtype):
    """Native sublane packing: 8 for 4-byte, 16 for 2-byte, 32 for 1-byte."""
    itemsize = jnp.dtype(dtype).itemsize
    return max(8, 32 // max(itemsize, 1))


def _tpu_vmem_capacity_bytes():
    try:
        info = pltpu.get_tpu_info()
        cap = getattr(info, "vmem_capacity_bytes", None)
        if isinstance(cap, int) and cap > 0:
            return cap
    except Exception:
        pass
    return None


def _num_tensorcores():
    """Best-effort count of TensorCores addressable via a parallel grid axis."""
    try:
        info = pltpu.get_tpu_info()
        for attr in ("num_cores", "tensorcores_per_chip", "cores_per_chip"):
            nc = getattr(info, attr, None)
            if isinstance(nc, int) and nc > 0:
                return nc
    except Exception:
        pass
    try:
        dev = jax.devices()[0]
        kind = (getattr(dev, "device_kind", "") or "").lower()
        if "v7" in kind:        # v7x: 2 TCs per chip
            return 2
        nc = getattr(dev, "num_cores", None)
        if isinstance(nc, int) and nc > 0:
            return nc
    except Exception:
        pass
    return 1


def _vmem_footprint_bytes(block_rows, block_hw, x_dtype, g_dtype, buffers=2):
    """Double-buffered VMEM bytes for one grid step, with lane/sublane padding."""
    x_item = jnp.dtype(x_dtype).itemsize
    g_item = jnp.dtype(g_dtype).itemsize
    rows_pad_x = _round_up(block_rows, _sublane_pack(x_dtype))
    rows_pad_g = _round_up(block_rows, _sublane_pack(g_dtype))
    hw_pad = _round_up(block_hw, 128)
    x_tile = rows_pad_x * hw_pad * x_item          # input tile
    o_tile = x_tile                                # output tile (same shape/dtype)
    g_tile = rows_pad_g * 128 * g_item             # (rows, 1) pads to 128 lanes
    return buffers * (x_tile + o_tile + g_tile)


def _select_tiling(rows, hw, x_dtype, g_dtype, vmem_budget_bytes, min_row_steps):
    """Largest legal (block_rows, block_hw) whose padded, double-buffered
    footprint fits the budget, producing at least `min_row_steps` row steps
    when possible (multi-TC sharding)."""
    pack = _sublane_pack(x_dtype)
    divisors = sorted((d for d in range(1, rows + 1) if rows % d == 0),
                      reverse=True)
    legal = [d for d in divisors if d == rows or d % pack == 0]
    if not legal:
        legal = [rows]

    def fits(br, bhw):
        return _vmem_footprint_bytes(br, bhw, x_dtype, g_dtype) <= vmem_budget_bytes

    # Preferred: row-only tiling (full hw on the lane axis), >= min_row_steps.
    for d in legal:
        if rows // d >= min_row_steps and fits(d, hw):
            return d, hw
    # Relax the min-step requirement (tiny `rows` cases / single-TC chips).
    for d in legal:
        if fits(d, hw):
            return d, hw
    # Fallback for enormous H*W: tile hw too, in 128-lane multiples, instead of
    # emitting a tile that blows past the budget.
    br = legal[-1]
    bhw = _round_up(hw, 128)
    while bhw > 128 and not fits(br, bhw):
        bhw -= 128
    return br, bhw


# ----------------------------------------------------------------------------
# Public wrapper
# ----------------------------------------------------------------------------
def sigmoid_mul(x241, x245, *, block_rows=None, block_hw=None,
                vmem_budget_bytes=None, min_row_steps=None,
                donate_input=False):
    """x241: (N, C, H, W), x245: (N, C, 1, 1) -> (N, C, H, W)

    donate_input=True adds input_output_aliases={0: 0} so the output reuses
    x241's buffer; only enable when x241 is dead after this op.
    """
    N, C, H, W = x241.shape
    assert x245.shape == (N, C, 1, 1)
    rows, hw = N * C, H * W

    x2d = x241.reshape(rows, hw)
    g2d = x245.reshape(rows, 1)

    cap = _tpu_vmem_capacity_bytes()
    if vmem_budget_bytes is None:
        # ~25% of physical VMEM when known (v5e/v6e 128MiB -> 32MiB,
        # v7x 64MiB -> 16MiB), conservative 24 MiB otherwise.
        vmem_budget_bytes = (cap // 4) if cap else (24 << 20)
    if min_row_steps is None:
        # v7x (2 TCs): shard the row axis across both cores. v5e/v6e: a single
        # step avoids the ~0.35us/step overhead; sweep {1,2,4} on v5e if
        # read/write overlap matters for your shape.
        min_row_steps = _num_tensorcores()

    if block_rows is None or block_hw is None:
        br, bhw = _select_tiling(rows, hw, x241.dtype, x245.dtype,
                                 vmem_budget_bytes, min_row_steps)
        block_rows = br if block_rows is None else block_rows
        block_hw = bhw if block_hw is None else block_hw

    if rows % block_rows != 0:
        raise ValueError(f"block_rows={block_rows} must divide rows={rows}")
    if block_hw < hw and block_hw % 128 != 0:
        raise ValueError(f"block_hw={block_hw} must be a multiple of 128 "
                         f"unless it covers the full hw={hw}")

    footprint = _vmem_footprint_bytes(block_rows, block_hw,
                                      x241.dtype, x245.dtype)
    vmem_limit = None
    if footprint > (14 << 20):  # above the most conservative scoped default
        ceiling = (cap - (8 << 20)) if cap else (30 << 20)
        vmem_limit = min(footprint + (4 << 20), max(ceiling, footprint))

    if block_hw >= hw:
        # Row-tiled only: the gate column rides along with each row block.
        grid = (rows // block_rows,)
        in_specs = [pl.BlockSpec((block_rows, hw), lambda i: (i, 0)),
                    pl.BlockSpec((block_rows, 1), lambda i: (i, 0))]
        out_specs = pl.BlockSpec((block_rows, hw), lambda i: (i, 0))
        dims = ("parallel",)
    else:
        # Huge-H*W fallback: second grid axis over hw (partial tail block is
        # masked by Pallas). Gate block is invariant along the hw axis.
        grid = (rows // block_rows, pl.cdiv(hw, block_hw))
        in_specs = [pl.BlockSpec((block_rows, block_hw), lambda i, j: (i, j)),
                    pl.BlockSpec((block_rows, 1), lambda i, j: (i, 0))]
        out_specs = pl.BlockSpec((block_rows, block_hw), lambda i, j: (i, j))
        dims = ("parallel", "parallel")

    out2d = pl.pallas_call(
        _sigmoid_gate_kernel,
        out_shape=jax.ShapeDtypeStruct((rows, hw), x241.dtype),
        grid=grid,
        in_specs=in_specs,
        out_specs=out_specs,
        input_output_aliases=({0: 0} if donate_input else {}),
        compiler_params=pltpu.CompilerParams(
            dimension_semantics=dims,
            vmem_limit_bytes=vmem_limit,
        ),
    )(x2d, g2d)

    return out2d.reshape(N, C, H, W)


# ----------------------------------------------------------------------------
# Self-test
# ----------------------------------------------------------------------------
if __name__ == "__main__":
    key = jax.random.PRNGKey(0)
    k1, k2 = jax.random.split(key)

    # Shapes from the module: x241 = [1, 672, 14, 14], x245 = [1, 672, 1, 1]
    x241 = jax.random.normal(k1, (1, 672, 14, 14), dtype=jnp.float32)
    x245 = jax.random.normal(k2, (1, 672, 1, 1), dtype=jnp.float32)

    # Reference computed up-front (also keeps the check valid if donate_input
    # is ever flipped on).
    ref = x241 * jax.nn.sigmoid(x245)

    out = sigmoid_mul(x241, x245)
    out = jax.block_until_ready(out)

    assert out.shape == (1, 672, 14, 14)
    assert jnp.allclose(out, ref, atol=1e-6, rtol=1e-6)

    print("KERNEL_OK")
</pallas_src>

<mosaic_0001>
module attributes {stable_mosaic.version = 11 : i64} {
  func.func @_sigmoid_gate_kernel(%arg0: i32, %arg1: memref<672x196xf32, #tpu.memory_space<vmem>>, %arg2: memref<672x1xf32, #tpu.memory_space<vmem>>, %arg3: memref<672x196xf32, #tpu.memory_space<vmem>>) attributes {dimension_semantics = [#tpu.dimension_semantics<parallel>], iteration_bounds = array<i64: 1>, scalar_prefetch = 0 : i64, scratch_operands = 0 : i64, tpu.core_type = #tpu.core_type<tc>, window_params = [{transform_indices = @transform_0, window_bounds = array<i64: 672, 196>}, {transform_indices = @transform_1, window_bounds = array<i64: 672, 1>}, {transform_indices = @transform_2, window_bounds = array<i64: 672, 196>}]} {
    %c0 = arith.constant 0 : index
    %c0_0 = arith.constant 0 : index
    %0 = vector.load %arg2[%c0, %c0_0] : memref<672x1xf32, #tpu.memory_space<vmem>>, vector<672x1xf32>
    %1 = arith.negf %0 : vector<672x1xf32>
    %2 = math.exp %1 : vector<672x1xf32>
    %cst = arith.constant 1.000000e+00 : f32
    %3 = vector.broadcast %cst : f32 to vector<672x1xf32>
    %4 = arith.addf %3, %2 : vector<672x1xf32>
    %5 = arith.divf %3, %4 : vector<672x1xf32>
    %c0_1 = arith.constant 0 : index
    %c0_2 = arith.constant 0 : index
    %6 = vector.load %arg1[%c0_1, %c0_2] : memref<672x196xf32, #tpu.memory_space<vmem>>, vector<672x196xf32>
    %7 = vector.broadcast %5 : vector<672x1xf32> to vector<672x196xf32>
    %8 = arith.mulf %6, %7 : vector<672x196xf32>
    %c0_3 = arith.constant 0 : index
    %c0_4 = arith.constant 0 : index
    %9 = vector.load %arg3[%c0_3, %c0_4] : memref<672x196xf32, #tpu.memory_space<vmem>>, vector<672x196xf32>
    tpu.vector_store %arg3[%c0_3, %c0_4], %8 {strides = array<i32>} : memref<672x196xf32, #tpu.memory_space<vmem>>, vector<672x196xf32>,
    return
  }
  func.func @transform_0(%arg0: i32) -> (i32, i32) {
    %c0_i32 = arith.constant 0 : i32
    %c0_i32_0 = arith.constant 0 : i32
    return %arg0, %c0_i32 : i32, i32
  }
  func.func @transform_1(%arg0: i32) -> (i32, i32) {
    %c0_i32 = arith.constant 0 : i32
    %c0_i32_0 = arith.constant 0 : i32
    return %arg0, %c0_i32 : i32, i32
  }
  func.func @transform_2(%arg0: i32) -> (i32, i32) {
    %c0_i32 = arith.constant 0 : i32
    %c0_i32_0 = arith.constant 0 : i32
    return %arg0, %c0_i32 : i32, i32
  }
}

</mosaic_0001>

<bundles_post_ra>
// kernel: tpu_custom_call.1
= control target key start
LH: loop header
LB: loop body
LE: loop exit
PB: predicated region body
PF: predicated region fallthrough
CT: control target
= control target key end

     0   :  { %v1951_v0 = vmov 0   ;;  %vm1356_vm0 = vcmask 556032   ;;  %s3311_s1 = inlined_call_operand.vmem [shape: f32[672,1], index: 1, kind: input, shape index: {}]   ;;  %s3312_s0 = inlined_call_operand.vmem [shape: f32[672,196], index: 0, kind: input, shape index: {}]   ;;  %s3313_s2 = inlined_call_operand.vmem [shape: f32[672,196], index: 2, kind: output, shape index: {}]  }
   0x1   :  { %1614 = vset.pattern.permute.xlu1 %v1951_v0  ;;  %1613 = vset.pattern.permute.xlu0 %v1951_v0  ;;  %v13_v1 = vld [vmem:[%s3311_s1 + $0x10] sm:$0xff]  ;;  %v11_v2 = vld [vmem:[%s3311_s1] sm:$0xff]  ;;  %v14_v3 = vld [vmem:[%s3311_s1 + $0x18] sm:$0xff] }
   0x2   :  { %v1530_v4 = vmul.f32 -1.442695, %v13_v1  ;;  %v1528_v5 = vmul.f32 -1.442695, %v11_v2  ;;  %v1531_v6 = vmul.f32 -1.442695, %v14_v3 }
   0x3   :  { %v12_v7 = vld [vmem:[%s3311_s1 + $0x8] sm:$0xff]  ;;  %v15_v9 = vld [vmem:[%s3311_s1 + $0x20] sm:$0xff]  ;;  %v18_v13 = vld [vmem:[%s3311_s1 + $0x38] sm:$0xff] }
   0x4   :  { %v16_v8 = vld [vmem:[%s3311_s1 + $0x28] sm:$0xff]  ;;  %1615 = vpow2.f32 %v1530_v4  ;;  %v1529_v10 = vmul.f32 -1.442695, %v12_v7  ;;  %v1532_v12 = vmul.f32 -1.442695, %v15_v9  ;;  %v17_v14 = vld [vmem:[%s3311_s1 + $0x30] sm:$0xff] }
   0x5   :  { %v1533_v11 = vmul.f32 -1.442695, %v16_v8  ;;  %1617 = vpow2.f32 %v1528_v5  ;;  %v20_v15 = vld [vmem:[%s3311_s1 + $0x48] sm:$0xff]  ;;  %v1535_v16 = vmul.f32 -1.442695, %v18_v13  ;;  %v19_v18 = vld [vmem:[%s3311_s1 + $0x40] sm:$0xff] }
   0x6   :  { %1619 = vpow2.f32 %v1531_v6  ;;  %v1534_v17 = vmul.f32 -1.442695, %v17_v14  ;;  %v22_v19 = vld [vmem:[%s3311_s1 + $0x58] sm:$0xff]  ;;  %v1537_v20 = vmul.f32 -1.442695, %v20_v15  ;;  %v21_v21 = vld [vmem:[%s3311_s1 + $0x50] sm:$0xff] }
   0x7   :  { %1621 = vpow2.f32 %v1529_v10  ;;  %v1536_v22 = vmul.f32 -1.442695, %v19_v18  ;;  %v24_v23 = vld [vmem:[%s3311_s1 + $0x68] sm:$0xff]  ;;  %v1539_v24 = vmul.f32 -1.442695, %v22_v19  ;;  %v23_v25 = vld [vmem:[%s3311_s1 + $0x60] sm:$0xff] }
   0x8   :  { %1623 = vpow2.f32 %v1533_v11  ;;  %v1538_v26 = vmul.f32 -1.442695, %v21_v21  ;;  %v26_v27 = vld [vmem:[%s3311_s1 + $0x78] sm:$0xff]  ;;  %v1541_v28 = vmul.f32 -1.442695, %v24_v23  ;;  %v25_v29 = vld [vmem:[%s3311_s1 + $0x70] sm:$0xff] }
   0x9   :  { %1625 = vpow2.f32 %v1532_v12  ;;  %v1540_v30 = vmul.f32 -1.442695, %v23_v25  ;;  %v1543_v31 = vmul.f32 -1.442695, %v26_v27  ;;  %v1542_v32 = vmul.f32 -1.442695, %v25_v29 }
   0xa   :  { %1627 = vpow2.f32 %v1535_v16  ;;  %v28_v58 = vld [vmem:[%s3311_s1 + $0x88] sm:$0xff]  ;;  %v27_v61 = vld [vmem:[%s3311_s1 + $0x80] sm:$0xff]  ;;  %v30_v0 = vld [vmem:[%s3311_s1 + $0x98] sm:$0xff] }
   0xb   :  { %1629 = vpow2.f32 %v1534_v17  ;;  %v1545_v3 = vmul.f32 -1.442695, %v28_v58  ;;  %v29_v4 = vld [vmem:[%s3311_s1 + $0x90] sm:$0xff]  ;;  %v1544_v7 = vmul.f32 -1.442695, %v27_v61  ;;  %v32_v8 = vld [vmem:[%s3311_s1 + $0xa8] sm:$0xff] }
   0xc   :  { %1631 = vpow2.f32 %v1537_v20  ;;  %v1547_v10 = vmul.f32 -1.442695, %v30_v0  ;;  %v31_v11 = vld [vmem:[%s3311_s1 + $0xa0] sm:$0xff]  ;;  %v1546_v13 = vmul.f32 -1.442695, %v29_v4  ;;  %v34_v14 = vld [vmem:[%s3311_s1 + $0xb8] sm:$0xff] }
   0xd   :  { %1633 = vpow2.f32 %v1536_v22  ;;  %v1549_v16 = vmul.f32 -1.442695, %v32_v8  ;;  %v33_v17 = vld [vmem:[%s3311_s1 + $0xb0] sm:$0xff]  ;;  %v1548_v19 = vmul.f32 -1.442695, %v31_v11  ;;  %v36_v20 = vld [vmem:[%s3311_s1 + $0xc8] sm:$0xff] }
   0xe   :  { %1635 = vpow2.f32 %v1539_v24  ;;  %v1551_v22 = vmul.f32 -1.442695, %v34_v14  ;;  %v35_v23 = vld [vmem:[%s3311_s1 + $0xc0] sm:$0xff]  ;;  %v1550_v25 = vmul.f32 -1.442695, %v33_v17  ;;  %v37_v29 = vld [vmem:[%s3311_s1 + $0xd0] sm:$0xff] }
   0xf   :  { %1637 = vpow2.f32 %v1538_v26  ;;  %v38_v26 = vld [vmem:[%s3311_s1 + $0xd8] sm:$0xff] }
  0x10   :  { %1639 = vpow2.f32 %v1541_v28  ;;  %v1553_v28 = vmul.f32 -1.442695, %v36_v20  ;;  %v45_v20 = vld [vmem:[%s3311_s1 + $0x110] sm:$0xff] }
  0x11   :  { %v1616_v33 = vpop.eup %1615  ;;  %1641 = vpow2.f32 %v1540_v30 }
  0x12   :  { %v1618_v34 = vpop.eup %1617  ;;  %v349_v35 = vadd.f32 1.0, %v1616_v33  ;;  %1643 = vpow2.f32 %v1543_v31  ;;  %v1552_v31 = vmul.f32 -1.442695, %v35_v23 }
  0x13   :  { %v1620_v36 = vpop.eup %1619  ;;  %v347_v37 = vadd.f32 1.0, %v1618_v34  ;;  %1645 = vpow2.f32 %v1542_v32  ;;  %v40_v32 = vld [vmem:[%s3311_s1 + $0xe8] sm:$0xff]  ;;  %v1555_v34 = vmul.f32 -1.442695, %v38_v26 }
  0x14   :  { %v1622_v38 = vpop.eup %1621  ;;  %1647 = vrcp.f32 %v349_v35  ;;  %v350_v39 = vadd.f32 1.0, %v1620_v36  ;;  %v39_v35 = vld [vmem:[%s3311_s1 + $0xe0] sm:$0xff] }
  0x15   :  { %v1624_v40 = vpop.eup %1623  ;;  %1649 = vrcp.f32 %v347_v37  ;;  %v348_v41 = vadd.f32 1.0, %v1622_v38  ;;  %v1554_v37 = vmul.f32 -1.442695, %v37_v29  ;;  %v42_v38 = vld [vmem:[%s3311_s1 + $0xf8] sm:$0xff]  ;;  %v1562_v29 = vmul.f32 -1.442695, %v45_v20 }
  0x16   :  { %v1626_v42 = vpop.eup %1625  ;;  %1651 = vrcp.f32 %v350_v39  ;;  %v352_v43 = vadd.f32 1.0, %v1624_v40  ;;  %v1557_v40 = vmul.f32 -1.442695, %v40_v32 }
  0x17   :  { %v1628_v44 = vpop.eup %1627  ;;  %1653 = vrcp.f32 %v348_v41  ;;  %v351_v45 = vadd.f32 1.0, %v1626_v42  ;;  %v41_v41 = vld [vmem:[%s3311_s1 + $0xf0] sm:$0xff] }
  0x18   :  { %v1630_v46 = vpop.eup %1629  ;;  %1655 = vrcp.f32 %v352_v43  ;;  %v354_v47 = vadd.f32 1.0, %v1628_v44  ;;  %v1556_v43 = vmul.f32 -1.442695, %v39_v35 }
  0x19   :  { %v1632_v48 = vpop.eup %1631  ;;  %1657 = vrcp.f32 %v351_v45  ;;  %v353_v49 = vadd.f32 1.0, %v1630_v46  ;;  %v1559_v45 = vmul.f32 -1.442695, %v42_v38 }
  0x1a   :  { %v1634_v50 = vpop.eup %1633  ;;  %1659 = vrcp.f32 %v354_v47  ;;  %v356_v51 = vadd.f32 1.0, %v1632_v48  ;;  %v1558_v47 = vmul.f32 -1.442695, %v41_v41 }
  0x1b   :  { %v1636_v52 = vpop.eup %1635  ;;  %1661 = vrcp.f32 %v353_v49  ;;  %v355_v53 = vadd.f32 1.0, %v1634_v50 }
  0x1c   :  { %v1638_v54 = vpop.eup %1637  ;;  %1663 = vrcp.f32 %v356_v51  ;;  %v358_v55 = vadd.f32 1.0, %v1636_v52 }
  0x1d   :  { %v1640_v56 = vpop.eup %1639  ;;  %1665 = vrcp.f32 %v355_v53  ;;  %v357_v57 = vadd.f32 1.0, %v1638_v54 }
  0x1e   :  { %v1642_v59 = vpop.eup %1641  ;;  %1667 = vrcp.f32 %v358_v55  ;;  %v360_v60 = vadd.f32 1.0, %v1640_v56 }
  0x1f   :  { %v1644_v62 = vpop.eup %1643  ;;  %1669 = vrcp.f32 %v357_v57  ;;  %v359_v63 = vadd.f32 1.0, %v1642_v59 }
  0x20   :  { %v1646_v1 = vpop.eup %1645  ;;  %1671 = vrcp.f32 %v360_v60  ;;  %v362_v2 = vadd.f32 1.0, %v1644_v62 }
  0x21   :  { %v1648_v5 = vpop.eup %1647  ;;  %1673 = vrcp.f32 %v359_v63  ;;  %v361_v6 = vadd.f32 1.0, %v1646_v1 }
  0x22   :  { %v1650_v9 = vpop.eup %1649  ;;  %779 = vperm.xlu1 %1614, %v1648_v5   ;;  %1675 = vrcp.f32 %v362_v2 }
  0x23   :  { %v1652_v12 = vpop.eup %1651  ;;  %769 = vperm.xlu0 %1613, %v1650_v9   ;;  %1677 = vrcp.f32 %v361_v6 }
  0x24   :  { %v1654_v15 = vpop.eup %1653  ;;  %1679 = vpow2.f32 %v1545_v3 }
  0x25   :  { %v1656_v18 = vpop.eup %1655  ;;  %1681 = vpow2.f32 %v1544_v7 }
  0x26   :  { %v1658_v21 = vpop.eup %1657  ;;  %784 = vperm.xlu1 %1614, %v1652_v12   ;;  %1683 = vpow2.f32 %v1547_v10  ;;  %v44_v10 = vld [vmem:[%s3311_s1 + $0x108] sm:$0xff] }
  0x27   :  { %v1660_v24 = vpop.eup %1659  ;;  %774 = vperm.xlu0 %1613, %v1654_v15   ;;  %1685 = vpow2.f32 %v1546_v13  ;;  %v43_v13 = vld [vmem:[%s3311_s1 + $0x100] sm:$0xff] }
  0x28   :  { %v1662_v27 = vpop.eup %1661  ;;  %1687 = vpow2.f32 %v1549_v16  ;;  %v46_v16 = vld [vmem:[%s3311_s1 + $0x118] sm:$0xff]  ;;  %v1560_v23 = vmul.f32 -1.442695, %v43_v13 }
  0x29   :  { %v1664_v30 = vpop.eup %1663  ;;  %1689 = vpow2.f32 %v1548_v19  ;;  %v1561_v19 = vmul.f32 -1.442695, %v44_v10  ;;  %v1563_v26 = vmul.f32 -1.442695, %v46_v16 }
  0x2a   :  { %v1666_v33 = vpop.eup %1665  ;;  %794 = vperm.xlu1 %1614, %v1656_v18   ;;  %1691 = vpow2.f32 %v1551_v22 }
  0x2b   :  { %v1668_v36 = vpop.eup %1667  ;;  %789 = vperm.xlu0 %1613, %v1658_v21   ;;  %1693 = vpow2.f32 %v1550_v25 }
  0x2c   :  { %v1670_v39 = vpop.eup %1669  ;;  %1695 = vpow2.f32 %v1553_v28 }
  0x2d   :  { %v1672_v42 = vpop.eup %1671  ;;  %1697 = vpow2.f32 %v1552_v31 }
  0x2e   :  { %v1674_v44 = vpop.eup %1673  ;;  %804 = vperm.xlu1 %1614, %v1660_v24   ;;  %1699 = vpow2.f32 %v1555_v34  ;;  %v48_v24 = vld [vmem:[%s3311_s1 + $0x128] sm:$0xff] }
  0x2f   :  { %v1676_v46 = vpop.eup %1675  ;;  %799 = vperm.xlu0 %1613, %v1662_v27   ;;  %1701 = vpow2.f32 %v1554_v37  ;;  %v47_v27 = vld [vmem:[%s3311_s1 + $0x120] sm:$0xff]  ;;  %v1565_v32 = vmul.f32 -1.442695, %v48_v24 }
  0x30   :  { %v1678_v48 = vpop.eup %1677  ;;  %1703 = vpow2.f32 %v1557_v40  ;;  %v1564_v35 = vmul.f32 -1.442695, %v47_v27 }
  0x31   :  { %v1680_v49 = vpop.eup %1679  ;;  %1705 = vpow2.f32 %v1556_v43 }
  0x32   :  { %v1682_v50 = vpop.eup %1681  ;;  %814 = vperm.xlu1 %1614, %v1664_v30   ;;  %v364_v51 = vadd.f32 1.0, %v1680_v49  ;;  %1707 = vpow2.f32 %v1559_v45  ;;  %v50_v30 = vld [vmem:[%s3311_s1 + $0x138] sm:$0xff]  ;;  %v53_v45 = vld [vmem:[%s3311_s1 + $0x150] sm:$0xff] }
  0x33   :  { %v1684_v52 = vpop.eup %1683  ;;  %809 = vperm.xlu0 %1613, %v1666_v33   ;;  %v363_v53 = vadd.f32 1.0, %v1682_v50  ;;  %1709 = vpow2.f32 %v1558_v47  ;;  %v49_v33 = vld [vmem:[%s3311_s1 + $0x130] sm:$0xff]  ;;  %v1567_v38 = vmul.f32 -1.442695, %v50_v30 }
  0x34   :  { %v1686_v54 = vpop.eup %1685  ;;  %1711 = vrcp.f32 %v364_v51  ;;  %v366_v55 = vadd.f32 1.0, %v1684_v52  ;;  %v1566_v41 = vmul.f32 -1.442695, %v49_v33  ;;  %v55_v51 = vld [vmem:[%s3311_s1 + $0x160] sm:$0xff] }
  0x35   :  { %v1688_v56 = vpop.eup %1687  ;;  %1713 = vrcp.f32 %v363_v53  ;;  %v365_v57 = vadd.f32 1.0, %v1686_v54  ;;  %v1570_v53 = vmul.f32 -1.442695, %v53_v45  ;;  %v58_v54 = vld [vmem:[%s3311_s1 + $0x178] sm:$0xff] }
  0x36   :  { %v1690_v58 = vpop.eup %1689  ;;  %824 = vperm.xlu1 %1614, %v1668_v36   ;;  %1715 = vrcp.f32 %v366_v55  ;;  %v368_v59 = vadd.f32 1.0, %v1688_v56  ;;  %v52_v36 = vld [vmem:[%s3311_s1 + $0x148] sm:$0xff] }
  0x37   :  { %v1692_v60 = vpop.eup %1691  ;;  %819 = vperm.xlu0 %1613, %v1670_v39   ;;  %1717 = vrcp.f32 %v365_v57  ;;  %v367_v61 = vadd.f32 1.0, %v1690_v58  ;;  %v51_v39 = vld [vmem:[%s3311_s1 + $0x140] sm:$0xff]  ;;  %v57_v57 = vld [vmem:[%s3311_s1 + $0x170] sm:$0xff] }
  0x38   :  { %v1694_v62 = vpop.eup %1693  ;;  %1719 = vrcp.f32 %v368_v59  ;;  %v370_v63 = vadd.f32 1.0, %v1692_v60  ;;  %v1568_v47 = vmul.f32 -1.442695, %v51_v39  ;;  %v1572_v59 = vmul.f32 -1.442695, %v55_v51 }
  0x39   :  { %v1696_v0 = vpop.eup %1695  ;;  %1721 = vrcp.f32 %v367_v61  ;;  %v369_v1 = vadd.f32 1.0, %v1694_v62  ;;  %v1575_v61 = vmul.f32 -1.442695, %v58_v54 }
  0x3a   :  { %v1698_v2 = vpop.eup %1697  ;;  %834 = vperm.xlu1 %1614, %v1672_v42   ;;  %1723 = vrcp.f32 %v370_v63  ;;  %v372_v3 = vadd.f32 1.0, %v1696_v0  ;;  %v54_v42 = vld [vmem:[%s3311_s1 + $0x158] sm:$0xff]  ;;  %v1574_v63 = vmul.f32 -1.442695, %v57_v57 }
  0x3b   :  { %v1700_v4 = vpop.eup %1699  ;;  %829 = vperm.xlu0 %1613, %v1674_v44   ;;  %1725 = vrcp.f32 %v369_v1  ;;  %v371_v5 = vadd.f32 1.0, %v1698_v2  ;;  %v1569_v44 = vmul.f32 -1.442695, %v52_v36  ;;  %v1571_v50 = vmul.f32 -1.442695, %v54_v42  ;;  %v61_v36 = vld [vmem:[%s3311_s1 + $0x190] sm:$0xff] }
  0x3c   :  { %v1702_v6 = vpop.eup %1701  ;;  %1727 = vrcp.f32 %v372_v3  ;;  %v374_v7 = vadd.f32 1.0, %v1700_v4  ;;  %v1578_v45 = vmul.f32 -1.442695, %v61_v36 }
  0x3d   :  { %v1704_v8 = vpop.eup %1703  ;;  %1729 = vrcp.f32 %v371_v5  ;;  %v373_v9 = vadd.f32 1.0, %v1702_v6 }
  0x3e   :  { %v1706_v11 = vpop.eup %1705  ;;  %844 = vperm.xlu1 %1614, %v1676_v46   ;;  %1731 = vrcp.f32 %v374_v7  ;;  %v376_v12 = vadd.f32 1.0, %v1704_v8 }
  0x3f   :  { %v1708_v14 = vpop.eup %1707  ;;  %839 = vperm.xlu0 %1613, %v1678_v48   ;;  %1733 = vrcp.f32 %v373_v9  ;;  %v375_v15 = vadd.f32 1.0, %v1706_v11  ;;  %v56_v48 = vld [vmem:[%s3311_s1 + $0x168] sm:$0xff] }
  0x40   :  { %v1710_v17 = vpop.eup %1709  ;;  %1735 = vrcp.f32 %v376_v12  ;;  %v378_v18 = vadd.f32 1.0, %v1708_v14  ;;  %v1573_v56 = vmul.f32 -1.442695, %v56_v48 }
  0x41   :  { %v1712_v21 = vpop.eup %1711  ;;  %1737 = vrcp.f32 %v375_v15  ;;  %v377_v22 = vadd.f32 1.0, %v1710_v17 }
  0x42   :  { %v1714_v25 = vpop.eup %1713  ;;  %854 = vperm.xlu1 %1614, %v1712_v21   ;;  %1739 = vrcp.f32 %v378_v18 }
  0x43   :  { %v1716_v28 = vpop.eup %1715  ;;  %849 = vperm.xlu0 %1613, %v1714_v25   ;;  %1741 = vrcp.f32 %v377_v22 }
  0x44   :  { %v1718_v31 = vpop.eup %1717  ;;  %1743 = vpow2.f32 %v1561_v19 }
  0x45   :  { %v1720_v34 = vpop.eup %1719  ;;  %1745 = vpow2.f32 %v1560_v23 }
  0x46   :  { %v1722_v37 = vpop.eup %1721  ;;  %864 = vperm.xlu1 %1614, %v1716_v28   ;;  %1747 = vpow2.f32 %v1563_v26  ;;  %v60_v26 = vld [vmem:[%s3311_s1 + $0x188] sm:$0xff] }
  0x47   :  { %v1724_v40 = vpop.eup %1723  ;;  %859 = vperm.xlu0 %1613, %v1718_v31   ;;  %1749 = vpow2.f32 %v1562_v29  ;;  %v59_v29 = vld [vmem:[%s3311_s1 + $0x180] sm:$0xff] }
  0x48   :  { %v1726_v43 = vpop.eup %1725  ;;  %1751 = vpow2.f32 %v1565_v32  ;;  %v62_v32 = vld [vmem:[%s3311_s1 + $0x198] sm:$0xff]  ;;  %v1576_v39 = vmul.f32 -1.442695, %v59_v29 }
  0x49   :  { %v1728_v46 = vpop.eup %1727  ;;  %1753 = vpow2.f32 %v1564_v35  ;;  %v1577_v35 = vmul.f32 -1.442695, %v60_v26  ;;  %v1579_v42 = vmul.f32 -1.442695, %v62_v32 }
  0x4a   :  { %v1730_v49 = vpop.eup %1729  ;;  %874 = vperm.xlu1 %1614, %v1720_v34   ;;  %1755 = vpow2.f32 %v1567_v38 }
  0x4b   :  { %v1732_v52 = vpop.eup %1731  ;;  %869 = vperm.xlu0 %1613, %v1722_v37   ;;  %1757 = vpow2.f32 %v1566_v41 }
  0x4c   :  { %v1734_v55 = vpop.eup %1733  ;;  %1759 = vpow2.f32 %v1569_v44 }
  0x4d   :  { %v1736_v58 = vpop.eup %1735  ;;  %1761 = vpow2.f32 %v1568_v47 }
  0x4e   :  { %v1738_v60 = vpop.eup %1737  ;;  %884 = vperm.xlu1 %1614, %v1724_v40   ;;  %1763 = vpow2.f32 %v1571_v50  ;;  %v64_v40 = vld [vmem:[%s3311_s1 + $0x1a8] sm:$0xff] }
  0x4f   :  { %v1740_v62 = vpop.eup %1739  ;;  %879 = vperm.xlu0 %1613, %v1726_v43   ;;  %1765 = vpow2.f32 %v1570_v53  ;;  %v63_v43 = vld [vmem:[%s3311_s1 + $0x1a0] sm:$0xff]  ;;  %v1581_v48 = vmul.f32 -1.442695, %v64_v40 }
  0x50   :  { %v1742_v0 = vpop.eup %1741  ;;  %1767 = vpow2.f32 %v1573_v56  ;;  %v1580_v51 = vmul.f32 -1.442695, %v63_v43 }
  0x51   :  { %v1744_v1 = vpop.eup %1743  ;;  %1769 = vpow2.f32 %v1572_v59 }
  0x52   :  { %v1746_v2 = vpop.eup %1745  ;;  %894 = vperm.xlu1 %1614, %v1728_v46   ;;  %v380_v3 = vadd.f32 1.0, %v1744_v1  ;;  %1771 = vpow2.f32 %v1575_v61  ;;  %v66_v46 = vld [vmem:[%s3311_s1 + $0x1b8] sm:$0xff]  ;;  %v69_v61 = vld [vmem:[%s3311_s1 + $0x1d0] sm:$0xff] }
  0x53   :  { %v1748_v4 = vpop.eup %1747  ;;  %889 = vperm.xlu0 %1613, %v1730_v49   ;;  %v379_v5 = vadd.f32 1.0, %v1746_v2  ;;  %1773 = vpow2.f32 %v1574_v63  ;;  %v65_v49 = vld [vmem:[%s3311_s1 + $0x1b0] sm:$0xff]  ;;  %v1583_v54 = vmul.f32 -1.442695, %v66_v46 }
  0x54   :  { %v1750_v6 = vpop.eup %1749  ;;  %1775 = vrcp.f32 %v380_v3  ;;  %v382_v7 = vadd.f32 1.0, %v1748_v4  ;;  %v1582_v57 = vmul.f32 -1.442695, %v65_v49  ;;  %v71_v3 = vld [vmem:[%s3311_s1 + $0x1e0] sm:$0xff] }
  0x55   :  { %v1752_v8 = vpop.eup %1751  ;;  %1777 = vrcp.f32 %v379_v5  ;;  %v381_v9 = vadd.f32 1.0, %v1750_v6  ;;  %v1586_v5 = vmul.f32 -1.442695, %v69_v61  ;;  %v74_v6 = vld [vmem:[%s3311_s1 + $0x1f8] sm:$0xff] }
  0x56   :  { %v1754_v10 = vpop.eup %1753  ;;  %904 = vperm.xlu1 %1614, %v1732_v52   ;;  %1779 = vrcp.f32 %v382_v7  ;;  %v384_v11 = vadd.f32 1.0, %v1752_v8  ;;  %v68_v52 = vld [vmem:[%s3311_s1 + $0x1c8] sm:$0xff] }
  0x57   :  { %v1756_v12 = vpop.eup %1755  ;;  %899 = vperm.xlu0 %1613, %v1734_v55   ;;  %1781 = vrcp.f32 %v381_v9  ;;  %v383_v13 = vadd.f32 1.0, %v1754_v10  ;;  %v67_v55 = vld [vmem:[%s3311_s1 + $0x1c0] sm:$0xff]  ;;  %v73_v9 = vld [vmem:[%s3311_s1 + $0x1f0] sm:$0xff] }
  0x58   :  { %v1758_v14 = vpop.eup %1757  ;;  %1783 = vrcp.f32 %v384_v11  ;;  %v386_v15 = vadd.f32 1.0, %v1756_v12  ;;  %v1584_v63 = vmul.f32 -1.442695, %v67_v55  ;;  %v1588_v11 = vmul.f32 -1.442695, %v71_v3 }
  0x59   :  { %v1760_v16 = vpop.eup %1759  ;;  %1785 = vrcp.f32 %v383_v13  ;;  %v385_v17 = vadd.f32 1.0, %v1758_v14  ;;  %v1591_v13 = vmul.f32 -1.442695, %v74_v6 }
  0x5a   :  { %v1762_v18 = vpop.eup %1761  ;;  %914 = vperm.xlu1 %1614, %v1736_v58   ;;  %1787 = vrcp.f32 %v386_v15  ;;  %v388_v19 = vadd.f32 1.0, %v1760_v16  ;;  %v70_v58 = vld [vmem:[%s3311_s1 + $0x1d8] sm:$0xff]  ;;  %v1590_v15 = vmul.f32 -1.442695, %v73_v9 }
  0x5b   :  { %v1764_v20 = vpop.eup %1763  ;;  %909 = vperm.xlu0 %1613, %v1738_v60   ;;  %1789 = vrcp.f32 %v385_v17  ;;  %v387_v21 = vadd.f32 1.0, %v1762_v18  ;;  %v1585_v60 = vmul.f32 -1.442695, %v68_v52  ;;  %v1587_v2 = vmul.f32 -1.442695, %v70_v58  ;;  %v77_v52 = vld [vmem:[%s3311_s1 + $0x210] sm:$0xff] }
  0x5c   :  { %v1766_v22 = vpop.eup %1765  ;;  %1791 = vrcp.f32 %v388_v19  ;;  %v390_v23 = vadd.f32 1.0, %v1764_v20  ;;  %v1594_v61 = vmul.f32 -1.442695, %v77_v52  ;;  %v604_v52 = vld [vmem:[%s3312_s0 + $0x28] sm:$0xff] }
  0x5d   :  { %v1768_v24 = vpop.eup %1767  ;;  %1793 = vrcp.f32 %v387_v21  ;;  %v389_v25 = vadd.f32 1.0, %v1766_v22 }
  0x5e   :  { %v1770_v27 = vpop.eup %1769  ;;  %924 = vperm.xlu1 %1614, %v1740_v62   ;;  %1795 = vrcp.f32 %v390_v23  ;;  %v392_v28 = vadd.f32 1.0, %v1768_v24 }
  0x5f   :  { %v1772_v30 = vpop.eup %1771  ;;  %919 = vperm.xlu0 %1613, %v1742_v0   ;;  %1797 = vrcp.f32 %v389_v25  ;;  %v391_v31 = vadd.f32 1.0, %v1770_v27  ;;  %v72_v0 = vld [vmem:[%s3311_s1 + $0x1e8] sm:$0xff] }
  0x60   :  { %v1774_v33 = vpop.eup %1773  ;;  %1799 = vrcp.f32 %v392_v28  ;;  %v394_v34 = vadd.f32 1.0, %v1772_v30  ;;  %v1589_v8 = vmul.f32 -1.442695, %v72_v0 }
  0x61   :  { %v1776_v37 = vpop.eup %1775  ;;  %1801 = vrcp.f32 %v391_v31  ;;  %v393_v38 = vadd.f32 1.0, %v1774_v33 }
  0x62   :  { %v1778_v41 = vpop.eup %1777  ;;  %934 = vperm.xlu1 %1614, %v1776_v37   ;;  %1803 = vrcp.f32 %v394_v34 }
  0x63   :  { %v1780_v44 = vpop.eup %1779  ;;  %929 = vperm.xlu0 %1613, %v1778_v41   ;;  %1805 = vrcp.f32 %v393_v38 }
  0x64   :  { %v1782_v47 = vpop.eup %1781  ;;  %1807 = vpow2.f32 %v1577_v35 }
  0x65   :  { %v1784_v50 = vpop.eup %1783  ;;  %1809 = vpow2.f32 %v1576_v39 }
  0x66   :  { %v1786_v53 = vpop.eup %1785  ;;  %944 = vperm.xlu1 %1614, %v1780_v44   ;;  %1811 = vpow2.f32 %v1579_v42  ;;  %v76_v42 = vld [vmem:[%s3311_s1 + $0x208] sm:$0xff] }
  0x67   :  { %v1788_v56 = vpop.eup %1787  ;;  %939 = vperm.xlu0 %1613, %v1782_v47   ;;  %1813 = vpow2.f32 %v1578_v45  ;;  %v75_v45 = vld [vmem:[%s3311_s1 + $0x200] sm:$0xff] }
  0x68   :  { %v1790_v59 = vpop.eup %1789  ;;  %1815 = vpow2.f32 %v1581_v48  ;;  %v78_v48 = vld [vmem:[%s3311_s1 + $0x218] sm:$0xff]  ;;  %v1592_v55 = vmul.f32 -1.442695, %v75_v45 }
  0x69   :  { %v1792_v62 = vpop.eup %1791  ;;  %1817 = vpow2.f32 %v1580_v51  ;;  %v1593_v51 = vmul.f32 -1.442695, %v76_v42  ;;  %v1595_v58 = vmul.f32 -1.442695, %v78_v48 }
  0x6a   :  { %v1794_v1 = vpop.eup %1793  ;;  %954 = vperm.xlu1 %1614, %v1784_v50   ;;  %1819 = vpow2.f32 %v1583_v54 }
  0x6b   :  { %v1796_v4 = vpop.eup %1795  ;;  %949 = vperm.xlu0 %1613, %v1786_v53   ;;  %1821 = vpow2.f32 %v1582_v57 }
  0x6c   :  { %v1798_v7 = vpop.eup %1797  ;;  %1823 = vpow2.f32 %v1585_v60 }
  0x6d   :  { %v1800_v10 = vpop.eup %1799  ;;  %1825 = vpow2.f32 %v1584_v63 }
  0x6e   :  { %v1802_v12 = vpop.eup %1801  ;;  %964 = vperm.xlu1 %1614, %v1788_v56   ;;  %1827 = vpow2.f32 %v1587_v2  ;;  %v80_v56 = vld [vmem:[%s3311_s1 + $0x228] sm:$0xff] }
  0x6f   :  { %v1804_v14 = vpop.eup %1803  ;;  %959 = vperm.xlu0 %1613, %v1790_v59   ;;  %1829 = vpow2.f32 %v1586_v5  ;;  %v79_v59 = vld [vmem:[%s3311_s1 + $0x220] sm:$0xff]  ;;  %v1597_v0 = vmul.f32 -1.442695, %v80_v56  ;;  %v600_v56 = vld [vmem:[%s3312_s0 + $0x8] sm:$0xff] }
  0x70   :  { %v1806_v16 = vpop.eup %1805  ;;  %1831 = vpow2.f32 %v1589_v8  ;;  %v1596_v3 = vmul.f32 -1.442695, %v79_v59 }
  0x71   :  { %v1808_v17 = vpop.eup %1807  ;;  %1833 = vpow2.f32 %v1588_v11 }
  0x72   :  { %v1810_v18 = vpop.eup %1809  ;;  %974 = vperm.xlu1 %1614, %v1792_v62   ;;  %v396_v19 = vadd.f32 1.0, %v1808_v17  ;;  %1835 = vpow2.f32 %v1591_v13  ;;  %v82_v62 = vld [vmem:[%s3311_s1 + $0x238] sm:$0xff]  ;;  %v85_v13 = vld [vmem:[%s3311_s1 + $0x250] sm:$0xff] }
  0x73   :  { %v1812_v20 = vpop.eup %1811  ;;  %969 = vperm.xlu0 %1613, %v1794_v1   ;;  %v395_v21 = vadd.f32 1.0, %v1810_v18  ;;  %1837 = vpow2.f32 %v1590_v15  ;;  %v81_v1 = vld [vmem:[%s3311_s1 + $0x230] sm:$0xff]  ;;  %v1599_v6 = vmul.f32 -1.442695, %v82_v62 }
  0x74   :  { %v1814_v22 = vpop.eup %1813  ;;  %1839 = vrcp.f32 %v396_v19  ;;  %v398_v23 = vadd.f32 1.0, %v1812_v20  ;;  %v1598_v9 = vmul.f32 -1.442695, %v81_v1  ;;  %v1602_v19 = vmul.f32 -1.442695, %v85_v13  ;;  %v88_v20 = vld [vmem:[%s3311_s1 + $0x268] sm:$0xff] }
  0x75   :  { %v1816_v24 = vpop.eup %1815  ;;  %1841 = vrcp.f32 %v395_v21  ;;  %v397_v25 = vadd.f32 1.0, %v1814_v22  ;;  %v87_v22 = vld [vmem:[%s3311_s1 + $0x260] sm:$0xff]  ;;  %v93_v13 = vld [vmem:[%s3311_s1 + $0x290] sm:$0xff] }
  0x76   :  { %v1818_v26 = vpop.eup %1817  ;;  %984 = vperm.xlu1 %1614, %v1796_v4   ;;  %1843 = vrcp.f32 %v398_v23  ;;  %v400_v27 = vadd.f32 1.0, %v1816_v24  ;;  %v84_v4 = vld [vmem:[%s3311_s1 + $0x248] sm:$0xff]  ;;  %v91_v1 = vld [vmem:[%s3311_s1 + $0x280] sm:$0xff] }
  0x77   :  { %v1820_v28 = vpop.eup %1819  ;;  %979 = vperm.xlu0 %1613, %v1798_v7   ;;  %1845 = vrcp.f32 %v397_v25  ;;  %v399_v29 = vadd.f32 1.0, %v1818_v26  ;;  %v83_v7 = vld [vmem:[%s3311_s1 + $0x240] sm:$0xff]  ;;  %v1605_v25 = vmul.f32 -1.442695, %v88_v20 }
  0x78   :  { %v1822_v30 = vpop.eup %1821  ;;  %1847 = vrcp.f32 %v400_v27  ;;  %v402_v31 = vadd.f32 1.0, %v1820_v28  ;;  %v1600_v15 = vmul.f32 -1.442695, %v83_v7  ;;  %v1604_v27 = vmul.f32 -1.442695, %v87_v22 }
  0x79   :  { %v1824_v32 = vpop.eup %1823  ;;  %1849 = vrcp.f32 %v399_v29  ;;  %v401_v33 = vadd.f32 1.0, %v1822_v30  ;;  %v90_v30 = vld [vmem:[%s3311_s1 + $0x278] sm:$0xff] }
  0x7a   :  { %v1826_v34 = vpop.eup %1825  ;;  %994 = vperm.xlu1 %1614, %v1800_v10   ;;  %1851 = vrcp.f32 %v402_v31  ;;  %v404_v35 = vadd.f32 1.0, %v1824_v32  ;;  %v86_v10 = vld [vmem:[%s3311_s1 + $0x258] sm:$0xff] }
  0x7b   :  { %v1828_v36 = vpop.eup %1827  ;;  %989 = vperm.xlu0 %1613, %v1802_v12   ;;  %1853 = vrcp.f32 %v401_v33  ;;  %v403_v37 = vadd.f32 1.0, %v1826_v34  ;;  %v1601_v12 = vmul.f32 -1.442695, %v84_v4  ;;  %v1603_v17 = vmul.f32 -1.442695, %v86_v10  ;;  %v89_v33 = vld [vmem:[%s3311_s1 + $0x270] sm:$0xff] }
  0x7c   :  { %v1830_v38 = vpop.eup %1829  ;;  %1855 = vrcp.f32 %v404_v35  ;;  %v406_v39 = vadd.f32 1.0, %v1828_v36  ;;  %v601_v10 = vld [vmem:[%s3312_s0 + $0x10] sm:$0xff] }
  0x7d   :  { %v1832_v40 = vpop.eup %1831  ;;  %1857 = vrcp.f32 %v403_v37  ;;  %v405_v41 = vadd.f32 1.0, %v1830_v38  ;;  %v1607_v38 = vmul.f32 -1.442695, %v90_v30  ;;  %v608_v30 = vld [vmem:[%s3312_s0 + $0x48] sm:$0xff] }
  0x7e   :  { %v1834_v43 = vpop.eup %1833  ;;  %1004 = vperm.xlu1 %1614, %v1804_v14   ;;  %1859 = vrcp.f32 %v406_v39  ;;  %v408_v44 = vadd.f32 1.0, %v1832_v40 }
  0x7f   :  { %v1836_v46 = vpop.eup %1835  ;;  %999 = vperm.xlu0 %1613, %v1806_v16   ;;  %1861 = vrcp.f32 %v405_v41  ;;  %v407_v47 = vadd.f32 1.0, %v1834_v43  ;;  %v1606_v41 = vmul.f32 -1.442695, %v89_v33 }
  0x80   :  { %v1838_v49 = vpop.eup %1837  ;;  %1863 = vrcp.f32 %v408_v44  ;;  %v410_v50 = vadd.f32 1.0, %v1836_v46 }
  0x81   :  { %v1840_v53 = vpop.eup %1839  ;;  %1865 = vrcp.f32 %v407_v47  ;;  %v409_v54 = vadd.f32 1.0, %v1838_v49 }
  0x82   :  { %v1842_v57 = vpop.eup %1841  ;;  %1014 = vperm.xlu1 %1614, %v1840_v53   ;;  %1867 = vrcp.f32 %v410_v50 }
  0x83   :  { %v1844_v60 = vpop.eup %1843  ;;  %1009 = vperm.xlu0 %1613, %v1842_v57   ;;  %1869 = vrcp.f32 %v409_v54 }
  0x84   :  { %v1846_v63 = vpop.eup %1845  ;;  %1871 = vpow2.f32 %v1593_v51  ;;  %v603_v51 = vld [vmem:[%s3312_s0 + $0x20] sm:$0xff] }
  0x85   :  { %v1848_v2 = vpop.eup %1847  ;;  %1873 = vpow2.f32 %v1592_v55  ;;  %v599_v55 = vld [vmem:[%s3312_s0] sm:$0xff] }
  0x86   :  { %v1850_v5 = vpop.eup %1849  ;;  %1024 = vperm.xlu1 %1614, %v1844_v60   ;;  %1875 = vpow2.f32 %v1595_v58  ;;  %v92_v60 = vld [vmem:[%s3311_s1 + $0x288] sm:$0xff] }
  0x87   :  { %v1852_v8 = vpop.eup %1851  ;;  %1019 = vperm.xlu0 %1613, %v1846_v63   ;;  %1877 = vpow2.f32 %v1594_v61 }
  0x88   :  { %v1854_v11 = vpop.eup %1853  ;;  %1879 = vpow2.f32 %v1597_v0 }
  0x89   :  { %v1856_v14 = vpop.eup %1855  ;;  %1881 = vpow2.f32 %v1596_v3 }
  0x8a   :  { %v1858_v16 = vpop.eup %1857  ;;  %1034 = vperm.xlu1 %1614, %v1848_v2   ;;  %1883 = vpow2.f32 %v1599_v6  ;;  %v606_v6 = vld [vmem:[%s3312_s0 + $0x38] sm:$0xff] }
  0x8b   :  { %v1860_v18 = vpop.eup %1859  ;;  %1029 = vperm.xlu0 %1613, %v1850_v5   ;;  %1885 = vpow2.f32 %v1598_v9  ;;  %v605_v5 = vld [vmem:[%s3312_s0 + $0x30] sm:$0xff] }
  0x8c   :  { %v1862_v21 = vpop.eup %1861  ;;  %1887 = vpow2.f32 %v1601_v12  ;;  %v1609_v12 = vmul.f32 -1.442695, %v92_v60  ;;  %v616_v60 = vld [vmem:[%s3312_s0 + $0x88] sm:$0xff] }
  0x8d   :  { %v1864_v23 = vpop.eup %1863  ;;  %1889 = vpow2.f32 %v1600_v15 }
  0x8e   :  { %v1866_v24 = vpop.eup %1865  ;;  %1044 = vperm.xlu1 %1614, %v1852_v8   ;;  %1891 = vpow2.f32 %v1603_v17  ;;  %v94_v8 = vld [vmem:[%s3311_s1 + $0x298] sm:$0xff] }
  0x8f   :  { %v1868_v26 = vpop.eup %1867  ;;  %1039 = vperm.xlu0 %1613, %v1854_v11   ;;  %1893 = vpow2.f32 %v1602_v19  ;;  %v602_v11 = vld [vmem:[%s3312_s0 + $0x18] sm:$0xff] }
  0x90   :  { %v1870_v28 = vpop.eup %1869  ;;  %1895 = vpow2.f32 %v1605_v25  ;;  %v609_v25 = vld [vmem:[%s3312_s0 + $0x50] sm:$0xff] }
  0x91   :  { %v1872_v29 = vpop.eup %1871  ;;  %1897 = vpow2.f32 %v1604_v27  ;;  %v1610_v27 = vmul.f32 -1.442695, %v93_v13 }
  0x92   :  { %v1874_v31 = vpop.eup %1873  ;;  %1054 = vperm.xlu1 %1614, %v1856_v14   ;;  %v412_v32 = vadd.f32 1.0, %v1872_v29  ;;  %v607_v29 = vld [vmem:[%s3312_s0 + $0x40] sm:$0xff] }
  0x93   :  { %v1876_v34 = vpop.eup %1875  ;;  %1049 = vperm.xlu0 %1613, %v1858_v16   ;;  %v411_v35 = vadd.f32 1.0, %v1874_v31  ;;  %v1608_v16 = vmul.f32 -1.442695, %v91_v1 }
  0x94   :  { %v1878_v36 = vpop.eup %1877  ;;  %1899 = vrcp.f32 %v412_v32  ;;  %v414_v37 = vadd.f32 1.0, %v1876_v34 }
  0x95   :  { %v1880_v39 = vpop.eup %1879  ;;  %1901 = vrcp.f32 %v411_v35  ;;  %v413_v40 = vadd.f32 1.0, %v1878_v36 }
  0x96   :  { %v1882_v42 = vpop.eup %1881  ;;  %1064 = vperm.xlu1 %1614, %v1860_v18   ;;  %1903 = vrcp.f32 %v414_v37  ;;  %v416_v43 = vadd.f32 1.0, %v1880_v39 }
  0x97   :  { %v1884_v44 = vpop.eup %1883  ;;  %1059 = vperm.xlu0 %1613, %v1862_v21   ;;  %1905 = vrcp.f32 %v413_v40  ;;  %v415_v45 = vadd.f32 1.0, %v1882_v42  ;;  %v1611_v21 = vmul.f32 -1.442695, %v94_v8  ;;  %v614_v42 = vld [vmem:[%s3312_s0 + $0x78] sm:$0xff] }
  0x98   :  { %v1886_v46 = vpop.eup %1885  ;;  %1907 = vpow2.f32 %v1607_v38  ;;  %v418_v49 = vadd.f32 1.0, %v1884_v44 }
  0x99   :  { %v1888_v47 = vpop.eup %1887  ;;  %1909 = vpow2.f32 %v1606_v41  ;;  %v417_v53 = vadd.f32 1.0, %v1886_v46  ;;  %v613_v41 = vld [vmem:[%s3312_s0 + $0x70] sm:$0xff]  ;;  %v612_v46 = vld [vmem:[%s3312_s0 + $0x68] sm:$0xff] }
  0x9a   :  { %v1890_v48 = vpop.eup %1889  ;;  %1074 = vperm.xlu1 %1614, %v1864_v23   ;;  %1911 = vrcp.f32 %v416_v43  ;;  %v420_v57 = vadd.f32 1.0, %v1888_v47 }
  0x9b   :  { %v1892_v50 = vpop.eup %1891  ;;  %1069 = vperm.xlu0 %1613, %v1866_v24   ;;  %1913 = vrcp.f32 %v415_v45  ;;  %v419_v59 = vadd.f32 1.0, %v1890_v48  ;;  %v611_v45 = vld [vmem:[%s3312_s0 + $0x60] sm:$0xff] }
  0x9c   :  { %v1894_v54 = vpop.eup %1893  ;;  %1915 = vrcp.f32 %v418_v49  ;;  %v422_v0 = vadd.f32 1.0, %v1892_v50 }
  0x9d   :  { %v780_v58 = vpop.permute.xlu1 %779  ;;  %v1896_v2 = vpop.eup %1895  ;;  %1917 = vrcp.f32 %v417_v53  ;;  %v421_v7 = vadd.f32 1.0, %v1894_v54 }
  0x9e   :  { %v1191_v61 = vmul.f32 %v780_v58, %v603_v51  ;;  %v1192_v62 = vmul.f32 %v780_v58, %v604_v52  ;;  %v770_v63 = vpop.permute.xlu0 %769  ;;  %1084 = vperm.xlu1 %1614, %v1868_v26   ;;  %v1898_v9 = vpop.eup %1897  ;;  %1919 = vrcp.f32 %v420_v57  ;;  %v610_v26 = vld [vmem:[%s3312_s0 + $0x58] sm:$0xff]  ;;  %v424_v37 = vadd.f32 1.0, %v1896_v2 }
  0x9f   :  { %v1187_v3 = vmul.f32 %v770_v63, %v599_v55  ;;  %v1188_v4 = vmul.f32 %v770_v63, %v600_v56  ;;  %1079 = vperm.xlu0 %1613, %v1870_v28   ;;  %1921 = vrcp.f32 %v419_v59  ;;  %v423_v43 = vadd.f32 1.0, %v1898_v9  ;;  %v617_v55 = vld [vmem:[%s3312_s0 + $0x90] sm:$0xff]  ;;  %v618_v56 = vld [vmem:[%s3312_s0 + $0x98] sm:$0xff]  ;;  %v615_v59 = vld [vmem:[%s3312_s0 + $0x80] sm:$0xff] }
  0xa0   :  { %1360 = vst [vmem:[%s3313_s2 + $0x20] sm:$0xff] %v1191_v61  ;;  %1361 = vst.msk [vmem:[%s3313_s2 + $0x28] sm:$0xff] %vm1356_vm0, %v1192_v62  ;;  %1923 = vrcp.f32 %v422_v0  ;;  %v619_v9 = vld [vmem:[%s3312_s0 + $0xa0] sm:$0xff] }
  0xa1   :  { %v1900_v14 = vpop.eup %1899  ;;  %1355 = vst [vmem:[%s3313_s2] sm:$0xff] %v1187_v3  ;;  %1357 = vst.msk [vmem:[%s3313_s2 + $0x8] sm:$0xff] %vm1356_vm0, %v1188_v4  ;;  %v785_v15 = vpop.permute.xlu1 %784  ;;  %1925 = vrcp.f32 %v421_v7  ;;  %v622_v7 = vld [vmem:[%s3312_s0 + $0xb8] sm:$0xff] }
  0xa2   :  { %v1902_v17 = vpop.eup %1901  ;;  %v1193_v18 = vmul.f32 %v785_v15, %v605_v5  ;;  %v1194_v19 = vmul.f32 %v785_v15, %v606_v6  ;;  %v775_v20 = vpop.permute.xlu0 %774  ;;  %1094 = vperm.xlu1 %1614, %v1900_v14   ;;  %1927 = vpow2.f32 %v1609_v12  ;;  %v621_v6 = vld [vmem:[%s3312_s0 + $0xb0] sm:$0xff] }
  0xa3   :  { %v1904_v22 = vpop.eup %1903  ;;  %v1189_v23 = vmul.f32 %v775_v20, %v601_v10  ;;  %v1190_v24 = vmul.f32 %v775_v20, %v602_v11  ;;  %1089 = vperm.xlu0 %1613, %v1902_v17   ;;  %1929 = vpow2.f32 %v1608_v16  ;;  %v620_v10 = vld [vmem:[%s3312_s0 + $0xa8] sm:$0xff] }
  0xa4   :  { %v1906_v28 = vpop.eup %1905  ;;  %1362 = vst [vmem:[%s3313_s2 + $0x30] sm:$0xff] %v1193_v18  ;;  %1363 = vst.msk [vmem:[%s3313_s2 + $0x38] sm:$0xff] %vm1356_vm0, %v1194_v19  ;;  %1931 = vpow2.f32 %v1611_v21  ;;  %v625_v21 = vld [vmem:[%s3312_s0 + $0xd0] sm:$0xff] }
  0xa5   :  { %v1908_v31 = vpop.eup %1907  ;;  %1358 = vst [vmem:[%s3313_s2 + $0x10] sm:$0xff] %v1189_v23  ;;  %1359 = vst.msk [vmem:[%s3313_s2 + $0x18] sm:$0xff] %vm1356_vm0, %v1190_v24  ;;  %v795_v32 = vpop.permute.xlu1 %794  ;;  %1933 = vpow2.f32 %v1610_v27 }
  0xa6   :  { %v1910_v33 = vpop.eup %1909  ;;  %v1197_v34 = vmul.f32 %v795_v32, %v609_v25  ;;  %v1198_v35 = vmul.f32 %v795_v32, %v610_v26  ;;  %v790_v36 = vpop.permute.xlu0 %789  ;;  %1104 = vperm.xlu1 %1614, %v1904_v22   ;;  %1935 = vrcp.f32 %v424_v37  ;;  %v426_v51 = vadd.f32 1.0, %v1908_v31  ;;  %v626_v22 = vld [vmem:[%s3312_s0 + $0xd8] sm:$0xff]  ;;  %v623_v25 = vld [vmem:[%s3312_s0 + $0xc0] sm:$0xff]  ;;  %v624_v26 = vld [vmem:[%s3312_s0 + $0xc8] sm:$0xff] }
  0xa7   :  { %v1912_v38 = vpop.eup %1911  ;;  %v1195_v39 = vmul.f32 %v790_v36, %v607_v29  ;;  %v1196_v40 = vmul.f32 %v790_v36, %v608_v30  ;;  %1099 = vperm.xlu0 %1613, %v1906_v28   ;;  %1937 = vrcp.f32 %v423_v43  ;;  %v425_v57 = vadd.f32 1.0, %v1910_v33  ;;  %v629_v36 = vld [vmem:[%s3312_s0 + $0xf0] sm:$0xff]  ;;  %v630_v37 = vld [vmem:[%s3312_s0 + $0xf8] sm:$0xff] }
  0xa8   :  { %v1914_v44 = vpop.eup %1913  ;;  %1366 = vst [vmem:[%s3313_s2 + $0x50] sm:$0xff] %v1197_v34  ;;  %1367 = vst.msk [vmem:[%s3313_s2 + $0x58] sm:$0xff] %vm1356_vm0, %v1198_v35  ;;  %1939 = vrcp.f32 %v426_v51  ;;  %v631_v51 = vld [vmem:[%s3312_s0 + $0x100] sm:$0xff] }
  0xa9   :  { %1364 = vst [vmem:[%s3313_s2 + $0x40] sm:$0xff] %v1195_v39  ;;  %1365 = vst.msk [vmem:[%s3313_s2 + $0x48] sm:$0xff] %vm1356_vm0, %v1196_v40  ;;  %v805_v47 = vpop.permute.xlu1 %804  ;;  %v1916_v52 = vpop.eup %1915  ;;  %1941 = vrcp.f32 %v425_v57  ;;  %v627_v39 = vld [vmem:[%s3312_s0 + $0xe0] sm:$0xff]  ;;  %v628_v40 = vld [vmem:[%s3312_s0 + $0xe8] sm:$0xff] }
  0xaa   :  { %v1201_v48 = vmul.f32 %v805_v47, %v613_v41  ;;  %v1202_v49 = vmul.f32 %v805_v47, %v614_v42  ;;  %v800_v50 = vpop.permute.xlu0 %799  ;;  %1114 = vperm.xlu1 %1614, %v1912_v38   ;;  %v1918_v58 = vpop.eup %1917 }
  0xab   :  { %v1199_v53 = vmul.f32 %v800_v50, %v611_v45  ;;  %v1200_v54 = vmul.f32 %v800_v50, %v612_v46  ;;  %1109 = vperm.xlu0 %1613, %v1914_v44   ;;  %v1920_v61 = vpop.eup %1919 }
  0xac   :  { %1370 = vst [vmem:[%s3313_s2 + $0x70] sm:$0xff] %v1201_v48  ;;  %1371 = vst.msk [vmem:[%s3313_s2 + $0x78] sm:$0xff] %vm1356_vm0, %v1202_v49  ;;  %v1922_v63 = vpop.eup %1921  ;;  %v633_v48 = vld [vmem:[%s3312_s0 + $0x110] sm:$0xff]  ;;  %v634_v49 = vld [vmem:[%s3312_s0 + $0x118] sm:$0xff] }
  0xad   :  { %1368 = vst [vmem:[%s3313_s2 + $0x60] sm:$0xff] %v1199_v53  ;;  %1369 = vst.msk [vmem:[%s3313_s2 + $0x68] sm:$0xff] %vm1356_vm0, %v1200_v54  ;;  %v815_v62 = vpop.permute.xlu1 %814  ;;  %v1924_v3 = vpop.eup %1923 }
  0xae   :  { %v1205_v0 = vmul.f32 %v815_v62, %v617_v55  ;;  %v1206_v1 = vmul.f32 %v815_v62, %v618_v56  ;;  %v810_v2 = vpop.permute.xlu0 %809  ;;  %1124 = vperm.xlu1 %1614, %v1916_v52   ;;  %v1926_v8 = vpop.eup %1925  ;;  %v632_v52 = vld [vmem:[%s3312_s0 + $0x108] sm:$0xff] }
  0xaf   :  { %v1203_v4 = vmul.f32 %v810_v2, %v615_v59  ;;  %v1204_v5 = vmul.f32 %v810_v2, %v616_v60  ;;  %1119 = vperm.xlu0 %1613, %v1918_v58   ;;  %v1928_v11 = vpop.eup %1927  ;;  %v637_v59 = vld [vmem:[%s3312_s0 + $0x130] sm:$0xff]  ;;  %v638_v60 = vld [vmem:[%s3312_s0 + $0x138] sm:$0xff]  ;;  %v636_v62 = vld [vmem:[%s3312_s0 + $0x128] sm:$0xff] }
  0xb0   :  { %1374 = vst [vmem:[%s3313_s2 + $0x90] sm:$0xff] %v1205_v0  ;;  %1375 = vst.msk [vmem:[%s3313_s2 + $0x98] sm:$0xff] %vm1356_vm0, %v1206_v1  ;;  %v1930_v13 = vpop.eup %1929  ;;  %v428_v17 = vadd.f32 1.0, %v1928_v11  ;;  %v639_v11 = vld [vmem:[%s3312_s0 + $0x140] sm:$0xff] }
  0xb1   :  { %1372 = vst [vmem:[%s3313_s2 + $0x80] sm:$0xff] %v1203_v4  ;;  %1373 = vst.msk [vmem:[%s3313_s2 + $0x88] sm:$0xff] %vm1356_vm0, %v1204_v5  ;;  %v825_v12 = vpop.permute.xlu1 %824  ;;  %v1932_v18 = vpop.eup %1931  ;;  %v427_v23 = vadd.f32 1.0, %v1930_v13 }
  0xb2   :  { %v1209_v14 = vmul.f32 %v825_v12, %v621_v6  ;;  %v1210_v15 = vmul.f32 %v825_v12, %v622_v7  ;;  %v820_v16 = vpop.permute.xlu0 %819  ;;  %1134 = vperm.xlu1 %1614, %v1920_v61   ;;  %v1934_v24 = vpop.eup %1933  ;;  %1943 = vrcp.f32 %v428_v17  ;;  %v430_v27 = vadd.f32 1.0, %v1932_v18  ;;  %v635_v61 = vld [vmem:[%s3312_s0 + $0x120] sm:$0xff]  ;;  %v640_v12 = vld [vmem:[%s3312_s0 + $0x148] sm:$0xff] }
  0xb3   :  { %v1207_v19 = vmul.f32 %v820_v16, %v619_v9  ;;  %v1208_v20 = vmul.f32 %v820_v16, %v620_v10  ;;  %1129 = vperm.xlu0 %1613, %v1922_v63   ;;  %1945 = vrcp.f32 %v427_v23  ;;  %v429_v29 = vadd.f32 1.0, %v1934_v24  ;;  %v1936_v33 = vpop.eup %1935  ;;  %v642_v9 = vld [vmem:[%s3312_s0 + $0x158] sm:$0xff] }
  0xb4   :  { %1378 = vst [vmem:[%s3313_s2 + $0xb0] sm:$0xff] %v1209_v14  ;;  %1379 = vst.msk [vmem:[%s3313_s2 + $0xb8] sm:$0xff] %vm1356_vm0, %v1210_v15  ;;  %1947 = vrcp.f32 %v430_v27  ;;  %v1938_v38 = vpop.eup %1937 }
  0xb5   :  { %1376 = vst [vmem:[%s3313_s2 + $0xa0] sm:$0xff] %v1207_v19  ;;  %1377 = vst.msk [vmem:[%s3313_s2 + $0xa8] sm:$0xff] %vm1356_vm0, %v1208_v20  ;;  %v835_v28 = vpop.permute.xlu1 %834  ;;  %1949 = vrcp.f32 %v429_v29  ;;  %v1940_v45 = vpop.eup %1939  ;;  %v645_v19 = vld [vmem:[%s3312_s0 + $0x170] sm:$0xff]  ;;  %v646_v20 = vld [vmem:[%s3312_s0 + $0x178] sm:$0xff] }
  0xb6   :  { %v1213_v30 = vmul.f32 %v835_v28, %v625_v21  ;;  %v1214_v31 = vmul.f32 %v835_v28, %v626_v22  ;;  %v830_v32 = vpop.permute.xlu0 %829  ;;  %1144 = vperm.xlu1 %1614, %v1924_v3   ;;  %v1942_v50 = vpop.eup %1941  ;;  %v643_v21 = vld [vmem:[%s3312_s0 + $0x160] sm:$0xff]  ;;  %v644_v22 = vld [vmem:[%s3312_s0 + $0x168] sm:$0xff]  ;;  %v649_v29 = vld [vmem:[%s3312_s0 + $0x190] sm:$0xff] }
  0xb7   :  { %v1211_v34 = vmul.f32 %v830_v32, %v623_v25  ;;  %v1212_v35 = vmul.f32 %v830_v32, %v624_v26  ;;  %1139 = vperm.xlu0 %1613, %v1926_v8   ;;  %v641_v8 = vld [vmem:[%s3312_s0 + $0x150] sm:$0xff]  ;;  %v648_v32 = vld [vmem:[%s3312_s0 + $0x188] sm:$0xff] }
  0xb8   :  { %1382 = vst [vmem:[%s3313_s2 + $0xd0] sm:$0xff] %v1213_v30  ;;  %1383 = vst.msk [vmem:[%s3313_s2 + $0xd8] sm:$0xff] %vm1356_vm0, %v1214_v31  ;;  %v650_v30 = vld [vmem:[%s3312_s0 + $0x198] sm:$0xff]  ;;  %v647_v31 = vld [vmem:[%s3312_s0 + $0x180] sm:$0xff] }
  0xb9   :  { %1380 = vst [vmem:[%s3313_s2 + $0xc0] sm:$0xff] %v1211_v34  ;;  %1381 = vst.msk [vmem:[%s3313_s2 + $0xc8] sm:$0xff] %vm1356_vm0, %v1212_v35  ;;  %v845_v41 = vpop.permute.xlu1 %844 }
  0xba   :  { %v1217_v42 = vmul.f32 %v845_v41, %v629_v36  ;;  %v1218_v43 = vmul.f32 %v845_v41, %v630_v37  ;;  %v840_v44 = vpop.permute.xlu0 %839  ;;  %1154 = vperm.xlu1 %1614, %v1936_v33   ;;  %v651_v41 = vld [vmem:[%s3312_s0 + $0x1a0] sm:$0xff] }
  0xbb   :  { %v1215_v46 = vmul.f32 %v840_v44, %v627_v39  ;;  %v1216_v47 = vmul.f32 %v840_v44, %v628_v40  ;;  %1149 = vperm.xlu0 %1613, %v1938_v38   ;;  %v653_v39 = vld [vmem:[%s3312_s0 + $0x1b0] sm:$0xff]  ;;  %v654_v40 = vld [vmem:[%s3312_s0 + $0x1b8] sm:$0xff] }
  0xbc   :  { %1386 = vst [vmem:[%s3313_s2 + $0xf0] sm:$0xff] %v1217_v42  ;;  %1387 = vst.msk [vmem:[%s3313_s2 + $0xf8] sm:$0xff] %vm1356_vm0, %v1218_v43  ;;  %v652_v42 = vld [vmem:[%s3312_s0 + $0x1a8] sm:$0xff] }
  0xbd   :  { %1384 = vst [vmem:[%s3313_s2 + $0xe0] sm:$0xff] %v1215_v46  ;;  %1385 = vst.msk [vmem:[%s3313_s2 + $0xe8] sm:$0xff] %vm1356_vm0, %v1216_v47  ;;  %v855_v53 = vpop.permute.xlu1 %854 }
  0xbe   :  { %v1221_v54 = vmul.f32 %v855_v53, %v633_v48  ;;  %v1222_v55 = vmul.f32 %v855_v53, %v634_v49  ;;  %v850_v56 = vpop.permute.xlu0 %849  ;;  %1164 = vperm.xlu1 %1614, %v1940_v45   ;;  %v657_v49 = vld [vmem:[%s3312_s0 + $0x1d0] sm:$0xff] }
  0xbf   :  { %v1219_v57 = vmul.f32 %v850_v56, %v631_v51  ;;  %v1220_v58 = vmul.f32 %v850_v56, %v632_v52  ;;  %1159 = vperm.xlu0 %1613, %v1942_v50   ;;  %v1944_v63 = vpop.eup %1943  ;;  %v658_v50 = vld [vmem:[%s3312_s0 + $0x1d8] sm:$0xff]  ;;  %v655_v51 = vld [vmem:[%s3312_s0 + $0x1c0] sm:$0xff]  ;;  %v656_v52 = vld [vmem:[%s3312_s0 + $0x1c8] sm:$0xff] }
  0xc0   :  { %1390 = vst [vmem:[%s3313_s2 + $0x110] sm:$0xff] %v1221_v54  ;;  %1391 = vst.msk [vmem:[%s3313_s2 + $0x118] sm:$0xff] %vm1356_vm0, %v1222_v55  ;;  %v1946_v1 = vpop.eup %1945 }
  0xc1   :  { %1388 = vst [vmem:[%s3313_s2 + $0x100] sm:$0xff] %v1219_v57  ;;  %1389 = vst.msk [vmem:[%s3313_s2 + $0x108] sm:$0xff] %vm1356_vm0, %v1220_v58  ;;  %v865_v0 = vpop.permute.xlu1 %864  ;;  %v1948_v5 = vpop.eup %1947 }
  0xc2   :  { %v1225_v2 = vmul.f32 %v865_v0, %v637_v59  ;;  %v1226_v3 = vmul.f32 %v865_v0, %v638_v60  ;;  %v860_v4 = vpop.permute.xlu0 %859  ;;  %1174 = vperm.xlu1 %1614, %v1944_v63   ;;  %v1950_v10 = vpop.eup %1949  ;;  %v661_v59 = vld [vmem:[%s3312_s0 + $0x1f0] sm:$0xff]  ;;  %v662_v60 = vld [vmem:[%s3312_s0 + $0x1f8] sm:$0xff] }
  0xc3   :  { %v1223_v6 = vmul.f32 %v860_v4, %v635_v61  ;;  %v1224_v7 = vmul.f32 %v860_v4, %v636_v62  ;;  %1169 = vperm.xlu0 %1613, %v1946_v1   ;;  %v659_v61 = vld [vmem:[%s3312_s0 + $0x1e0] sm:$0xff]  ;;  %v660_v62 = vld [vmem:[%s3312_s0 + $0x1e8] sm:$0xff] }
  0xc4   :  { %1394 = vst [vmem:[%s3313_s2 + $0x130] sm:$0xff] %v1225_v2  ;;  %1395 = vst.msk [vmem:[%s3313_s2 + $0x138] sm:$0xff] %vm1356_vm0, %v1226_v3 }
  0xc5   :  { %1392 = vst [vmem:[%s3313_s2 + $0x120] sm:$0xff] %v1223_v6  ;;  %1393 = vst.msk [vmem:[%s3313_s2 + $0x128] sm:$0xff] %vm1356_vm0, %v1224_v7  ;;  %v875_v13 = vpop.permute.xlu1 %874  ;;  %v666_v6 = vld [vmem:[%s3312_s0 + $0x218] sm:$0xff]  ;;  %v663_v7 = vld [vmem:[%s3312_s0 + $0x200] sm:$0xff] }
  0xc6   :  { %v1229_v14 = vmul.f32 %v875_v13, %v641_v8  ;;  %v1230_v15 = vmul.f32 %v875_v13, %v642_v9  ;;  %v870_v16 = vpop.permute.xlu0 %869  ;;  %1184 = vperm.xlu1 %1614, %v1948_v5   ;;  %v665_v5 = vld [vmem:[%s3312_s0 + $0x210] sm:$0xff]  ;;  %v664_v8 = vld [vmem:[%s3312_s0 + $0x208] sm:$0xff] }
  0xc7   :  { %v1227_v17 = vmul.f32 %v870_v16, %v639_v11  ;;  %v1228_v18 = vmul.f32 %v870_v16, %v640_v12  ;;  %1179 = vperm.xlu0 %1613, %v1950_v10   ;;  %v670_v16 = vld [vmem:[%s3312_s0 + $0x238] sm:$0xff] }
  0xc8   :  { %1398 = vst [vmem:[%s3313_s2 + $0x150] sm:$0xff] %v1229_v14  ;;  %1399 = vst.msk [vmem:[%s3313_s2 + $0x158] sm:$0xff] %vm1356_vm0, %v1230_v15  ;;  %v669_v15 = vld [vmem:[%s3312_s0 + $0x230] sm:$0xff] }
  0xc9   :  { %1396 = vst [vmem:[%s3313_s2 + $0x140] sm:$0xff] %v1227_v17  ;;  %1397 = vst.msk [vmem:[%s3313_s2 + $0x148] sm:$0xff] %vm1356_vm0, %v1228_v18  ;;  %v885_v23 = vpop.permute.xlu1 %884  ;;  %v667_v17 = vld [vmem:[%s3312_s0 + $0x220] sm:$0xff]  ;;  %v668_v18 = vld [vmem:[%s3312_s0 + $0x228] sm:$0xff] }
  0xca   :  { %v1233_v24 = vmul.f32 %v885_v23, %v645_v19  ;;  %v1234_v25 = vmul.f32 %v885_v23, %v646_v20  ;;  %v880_v26 = vpop.permute.xlu0 %879 }
  0xcb   :  { %v1231_v27 = vmul.f32 %v880_v26, %v643_v21  ;;  %v1232_v28 = vmul.f32 %v880_v26, %v644_v22  ;;  %v674_v26 = vld [vmem:[%s3312_s0 + $0x258] sm:$0xff] }
  0xcc   :  { %1402 = vst [vmem:[%s3313_s2 + $0x170] sm:$0xff] %v1233_v24  ;;  %1403 = vst.msk [vmem:[%s3313_s2 + $0x178] sm:$0xff] %vm1356_vm0, %v1234_v25  ;;  %v673_v25 = vld [vmem:[%s3312_s0 + $0x250] sm:$0xff] }
  0xcd   :  { %1400 = vst [vmem:[%s3313_s2 + $0x160] sm:$0xff] %v1231_v27  ;;  %1401 = vst.msk [vmem:[%s3313_s2 + $0x168] sm:$0xff] %vm1356_vm0, %v1232_v28  ;;  %v895_v33 = vpop.permute.xlu1 %894  ;;  %v671_v27 = vld [vmem:[%s3312_s0 + $0x240] sm:$0xff]  ;;  %v672_v28 = vld [vmem:[%s3312_s0 + $0x248] sm:$0xff] }
  0xce   :  { %v1237_v34 = vmul.f32 %v895_v33, %v649_v29  ;;  %v1238_v35 = vmul.f32 %v895_v33, %v650_v30  ;;  %v890_v36 = vpop.permute.xlu0 %889 }
  0xcf   :  { %v1235_v37 = vmul.f32 %v890_v36, %v647_v31  ;;  %v1236_v38 = vmul.f32 %v890_v36, %v648_v32  ;;  %v678_v36 = vld [vmem:[%s3312_s0 + $0x278] sm:$0xff] }
  0xd0   :  { %1406 = vst [vmem:[%s3313_s2 + $0x190] sm:$0xff] %v1237_v34  ;;  %1407 = vst.msk [vmem:[%s3313_s2 + $0x198] sm:$0xff] %vm1356_vm0, %v1238_v35  ;;  %v677_v35 = vld [vmem:[%s3312_s0 + $0x270] sm:$0xff] }
  0xd1   :  { %1404 = vst [vmem:[%s3313_s2 + $0x180] sm:$0xff] %v1235_v37  ;;  %1405 = vst.msk [vmem:[%s3313_s2 + $0x188] sm:$0xff] %vm1356_vm0, %v1236_v38  ;;  %v905_v43 = vpop.permute.xlu1 %904  ;;  %v675_v37 = vld [vmem:[%s3312_s0 + $0x260] sm:$0xff]  ;;  %v676_v38 = vld [vmem:[%s3312_s0 + $0x268] sm:$0xff] }
  0xd2   :  { %v1241_v44 = vmul.f32 %v905_v43, %v653_v39  ;;  %v1242_v45 = vmul.f32 %v905_v43, %v654_v40  ;;  %v900_v46 = vpop.permute.xlu0 %899 }
  0xd3   :  { %v1239_v47 = vmul.f32 %v900_v46, %v651_v41  ;;  %v1240_v48 = vmul.f32 %v900_v46, %v652_v42  ;;  %v682_v46 = vld [vmem:[%s3312_s0 + $0x298] sm:$0xff] }
  0xd4   :  { %1410 = vst [vmem:[%s3313_s2 + $0x1b0] sm:$0xff] %v1241_v44  ;;  %1411 = vst.msk [vmem:[%s3313_s2 + $0x1b8] sm:$0xff] %vm1356_vm0, %v1242_v45  ;;  %v681_v45 = vld [vmem:[%s3312_s0 + $0x290] sm:$0xff] }
  0xd5   :  { %1408 = vst [vmem:[%s3313_s2 + $0x1a0] sm:$0xff] %v1239_v47  ;;  %1409 = vst.msk [vmem:[%s3313_s2 + $0x1a8] sm:$0xff] %vm1356_vm0, %v1240_v48  ;;  %v915_v53 = vpop.permute.xlu1 %914  ;;  %v679_v47 = vld [vmem:[%s3312_s0 + $0x280] sm:$0xff]  ;;  %v680_v48 = vld [vmem:[%s3312_s0 + $0x288] sm:$0xff] }
  0xd6   :  { %v1245_v54 = vmul.f32 %v915_v53, %v657_v49  ;;  %v1246_v55 = vmul.f32 %v915_v53, %v658_v50  ;;  %v910_v56 = vpop.permute.xlu0 %909 }
  0xd7   :  { %v1243_v57 = vmul.f32 %v910_v56, %v655_v51  ;;  %v1244_v58 = vmul.f32 %v910_v56, %v656_v52  ;;  %v686_v56 = vld [vmem:[%s3312_s0 + $0x2b8] sm:$0xff] }
  0xd8   :  { %1414 = vst [vmem:[%s3313_s2 + $0x1d0] sm:$0xff] %v1245_v54  ;;  %1415 = vst.msk [vmem:[%s3313_s2 + $0x1d8] sm:$0xff] %vm1356_vm0, %v1246_v55  ;;  %v685_v55 = vld [vmem:[%s3312_s0 + $0x2b0] sm:$0xff] }
  0xd9   :  { %1412 = vst [vmem:[%s3313_s2 + $0x1c0] sm:$0xff] %v1243_v57  ;;  %1413 = vst.msk [vmem:[%s3313_s2 + $0x1c8] sm:$0xff] %vm1356_vm0, %v1244_v58  ;;  %v925_v63 = vpop.permute.xlu1 %924  ;;  %v683_v57 = vld [vmem:[%s3312_s0 + $0x2a0] sm:$0xff]  ;;  %v684_v58 = vld [vmem:[%s3312_s0 + $0x2a8] sm:$0xff] }
  0xda   :  { %v1249_v0 = vmul.f32 %v925_v63, %v661_v59  ;;  %v1250_v1 = vmul.f32 %v925_v63, %v662_v60  ;;  %v920_v2 = vpop.permute.xlu0 %919 }
  0xdb   :  { %v1247_v3 = vmul.f32 %v920_v2, %v659_v61  ;;  %v1248_v4 = vmul.f32 %v920_v2, %v660_v62  ;;  %v690_v2 = vld [vmem:[%s3312_s0 + $0x2d8] sm:$0xff] }
  0xdc   :  { %1418 = vst [vmem:[%s3313_s2 + $0x1f0] sm:$0xff] %v1249_v0  ;;  %1419 = vst.msk [vmem:[%s3313_s2 + $0x1f8] sm:$0xff] %vm1356_vm0, %v1250_v1  ;;  %v689_v1 = vld [vmem:[%s3312_s0 + $0x2d0] sm:$0xff] }
  0xdd   :  { %1416 = vst [vmem:[%s3313_s2 + $0x1e0] sm:$0xff] %v1247_v3  ;;  %1417 = vst.msk [vmem:[%s3313_s2 + $0x1e8] sm:$0xff] %vm1356_vm0, %v1248_v4  ;;  %v935_v9 = vpop.permute.xlu1 %934  ;;  %v687_v3 = vld [vmem:[%s3312_s0 + $0x2c0] sm:$0xff]  ;;  %v688_v4 = vld [vmem:[%s3312_s0 + $0x2c8] sm:$0xff] }
  0xde   :  { %v1253_v10 = vmul.f32 %v935_v9, %v665_v5  ;;  %v1254_v11 = vmul.f32 %v935_v9, %v666_v6  ;;  %v930_v12 = vpop.permute.xlu0 %929 }
  0xdf   :  { %v1251_v13 = vmul.f32 %v930_v12, %v663_v7  ;;  %v1252_v14 = vmul.f32 %v930_v12, %v664_v8  ;;  %v694_v12 = vld [vmem:[%s3312_s0 + $0x2f8] sm:$0xff] }
  0xe0   :  { %1422 = vst [vmem:[%s3313_s2 + $0x210] sm:$0xff] %v1253_v10  ;;  %1423 = vst.msk [vmem:[%s3313_s2 + $0x218] sm:$0xff] %vm1356_vm0, %v1254_v11  ;;  %v693_v11 = vld [vmem:[%s3312_s0 + $0x2f0] sm:$0xff] }
  0xe1   :  { %1420 = vst [vmem:[%s3313_s2 + $0x200] sm:$0xff] %v1251_v13  ;;  %1421 = vst.msk [vmem:[%s3313_s2 + $0x208] sm:$0xff] %vm1356_vm0, %v1252_v14  ;;  %v945_v19 = vpop.permute.xlu1 %944  ;;  %v691_v13 = vld [vmem:[%s3312_s0 + $0x2e0] sm:$0xff]  ;;  %v692_v14 = vld [vmem:[%s3312_s0 + $0x2e8] sm:$0xff] }
  0xe2   :  { %v1257_v20 = vmul.f32 %v945_v19, %v669_v15  ;;  %v1258_v21 = vmul.f32 %v945_v19, %v670_v16  ;;  %v940_v22 = vpop.permute.xlu0 %939 }
  0xe3   :  { %v1255_v23 = vmul.f32 %v940_v22, %v667_v17  ;;  %v1256_v24 = vmul.f32 %v940_v22, %v668_v18  ;;  %v698_v22 = vld [vmem:[%s3312_s0 + $0x318] sm:$0xff] }
  0xe4   :  { %1426 = vst [vmem:[%s3313_s2 + $0x230] sm:$0xff] %v1257_v20  ;;  %1427 = vst.msk [vmem:[%s3313_s2 + $0x238] sm:$0xff] %vm1356_vm0, %v1258_v21  ;;  %v697_v21 = vld [vmem:[%s3312_s0 + $0x310] sm:$0xff] }
  0xe5   :  { %1424 = vst [vmem:[%s3313_s2 + $0x220] sm:$0xff] %v1255_v23  ;;  %1425 = vst.msk [vmem:[%s3313_s2 + $0x228] sm:$0xff] %vm1356_vm0, %v1256_v24  ;;  %v955_v29 = vpop.permute.xlu1 %954  ;;  %v695_v23 = vld [vmem:[%s3312_s0 + $0x300] sm:$0xff]  ;;  %v696_v24 = vld [vmem:[%s3312_s0 + $0x308] sm:$0xff] }
  0xe6   :  { %v1261_v30 = vmul.f32 %v955_v29, %v673_v25  ;;  %v1262_v31 = vmul.f32 %v955_v29, %v674_v26  ;;  %v950_v32 = vpop.permute.xlu0 %949 }
  0xe7   :  { %v1259_v33 = vmul.f32 %v950_v32, %v671_v27  ;;  %v1260_v34 = vmul.f32 %v950_v32, %v672_v28  ;;  %v702_v32 = vld [vmem:[%s3312_s0 + $0x338] sm:$0xff] }
  0xe8   :  { %1430 = vst [vmem:[%s3313_s2 + $0x250] sm:$0xff] %v1261_v30  ;;  %1431 = vst.msk [vmem:[%s3313_s2 + $0x258] sm:$0xff] %vm1356_vm0, %v1262_v31  ;;  %v701_v31 = vld [vmem:[%s3312_s0 + $0x330] sm:$0xff] }
  0xe9   :  { %1428 = vst [vmem:[%s3313_s2 + $0x240] sm:$0xff] %v1259_v33  ;;  %1429 = vst.msk [vmem:[%s3313_s2 + $0x248] sm:$0xff] %vm1356_vm0, %v1260_v34  ;;  %v965_v39 = vpop.permute.xlu1 %964  ;;  %v699_v33 = vld [vmem:[%s3312_s0 + $0x320] sm:$0xff]  ;;  %v700_v34 = vld [vmem:[%s3312_s0 + $0x328] sm:$0xff] }
  0xea   :  { %v1265_v40 = vmul.f32 %v965_v39, %v677_v35  ;;  %v1266_v41 = vmul.f32 %v965_v39, %v678_v36  ;;  %v960_v42 = vpop.permute.xlu0 %959 }
  0xeb   :  { %v1263_v43 = vmul.f32 %v960_v42, %v675_v37  ;;  %v1264_v44 = vmul.f32 %v960_v42, %v676_v38  ;;  %v706_v42 = vld [vmem:[%s3312_s0 + $0x358] sm:$0xff] }
  0xec   :  { %1434 = vst [vmem:[%s3313_s2 + $0x270] sm:$0xff] %v1265_v40  ;;  %1435 = vst.msk [vmem:[%s3313_s2 + $0x278] sm:$0xff] %vm1356_vm0, %v1266_v41  ;;  %v705_v41 = vld [vmem:[%s3312_s0 + $0x350] sm:$0xff] }
  0xed   :  { %1432 = vst [vmem:[%s3313_s2 + $0x260] sm:$0xff] %v1263_v43  ;;  %1433 = vst.msk [vmem:[%s3313_s2 + $0x268] sm:$0xff] %vm1356_vm0, %v1264_v44  ;;  %v975_v49 = vpop.permute.xlu1 %974  ;;  %v703_v43 = vld [vmem:[%s3312_s0 + $0x340] sm:$0xff]  ;;  %v704_v44 = vld [vmem:[%s3312_s0 + $0x348] sm:$0xff] }
  0xee   :  { %v1269_v50 = vmul.f32 %v975_v49, %v681_v45  ;;  %v1270_v51 = vmul.f32 %v975_v49, %v682_v46  ;;  %v970_v52 = vpop.permute.xlu0 %969 }
  0xef   :  { %v1267_v53 = vmul.f32 %v970_v52, %v679_v47  ;;  %v1268_v54 = vmul.f32 %v970_v52, %v680_v48  ;;  %v710_v52 = vld [vmem:[%s3312_s0 + $0x378] sm:$0xff] }
  0xf0   :  { %1438 = vst [vmem:[%s3313_s2 + $0x290] sm:$0xff] %v1269_v50  ;;  %1439 = vst.msk [vmem:[%s3313_s2 + $0x298] sm:$0xff] %vm1356_vm0, %v1270_v51  ;;  %v709_v51 = vld [vmem:[%s3312_s0 + $0x370] sm:$0xff] }
  0xf1   :  { %1436 = vst [vmem:[%s3313_s2 + $0x280] sm:$0xff] %v1267_v53  ;;  %1437 = vst.msk [vmem:[%s3313_s2 + $0x288] sm:$0xff] %vm1356_vm0, %v1268_v54  ;;  %v985_v59 = vpop.permute.xlu1 %984  ;;  %v707_v53 = vld [vmem:[%s3312_s0 + $0x360] sm:$0xff]  ;;  %v708_v54 = vld [vmem:[%s3312_s0 + $0x368] sm:$0xff] }
  0xf2   :  { %v1273_v60 = vmul.f32 %v985_v59, %v685_v55  ;;  %v1274_v61 = vmul.f32 %v985_v59, %v686_v56  ;;  %v980_v62 = vpop.permute.xlu0 %979 }
  0xf3   :  { %v1271_v63 = vmul.f32 %v980_v62, %v683_v57  ;;  %v1272_v0 = vmul.f32 %v980_v62, %v684_v58  ;;  %v714_v62 = vld [vmem:[%s3312_s0 + $0x398] sm:$0xff] }
  0xf4   :  { %1442 = vst [vmem:[%s3313_s2 + $0x2b0] sm:$0xff] %v1273_v60  ;;  %1443 = vst.msk [vmem:[%s3313_s2 + $0x2b8] sm:$0xff] %vm1356_vm0, %v1274_v61  ;;  %v713_v61 = vld [vmem:[%s3312_s0 + $0x390] sm:$0xff] }
  0xf5   :  { %1440 = vst [vmem:[%s3313_s2 + $0x2a0] sm:$0xff] %v1271_v63  ;;  %1441 = vst.msk [vmem:[%s3313_s2 + $0x2a8] sm:$0xff] %vm1356_vm0, %v1272_v0  ;;  %v995_v5 = vpop.permute.xlu1 %994  ;;  %v711_v63 = vld [vmem:[%s3312_s0 + $0x380] sm:$0xff]  ;;  %v712_v0 = vld [vmem:[%s3312_s0 + $0x388] sm:$0xff] }
  0xf6   :  { %v1277_v6 = vmul.f32 %v995_v5, %v689_v1  ;;  %v1278_v7 = vmul.f32 %v995_v5, %v690_v2  ;;  %v990_v8 = vpop.permute.xlu0 %989 }
  0xf7   :  { %v1275_v9 = vmul.f32 %v990_v8, %v687_v3  ;;  %v1276_v10 = vmul.f32 %v990_v8, %v688_v4  ;;  %v718_v8 = vld [vmem:[%s3312_s0 + $0x3b8] sm:$0xff] }
  0xf8   :  { %1446 = vst [vmem:[%s3313_s2 + $0x2d0] sm:$0xff] %v1277_v6  ;;  %1447 = vst.msk [vmem:[%s3313_s2 + $0x2d8] sm:$0xff] %vm1356_vm0, %v1278_v7  ;;  %v717_v7 = vld [vmem:[%s3312_s0 + $0x3b0] sm:$0xff] }
  0xf9   :  { %1444 = vst [vmem:[%s3313_s2 + $0x2c0] sm:$0xff] %v1275_v9  ;;  %1445 = vst.msk [vmem:[%s3313_s2 + $0x2c8] sm:$0xff] %vm1356_vm0, %v1276_v10  ;;  %v1005_v15 = vpop.permute.xlu1 %1004  ;;  %v715_v9 = vld [vmem:[%s3312_s0 + $0x3a0] sm:$0xff]  ;;  %v716_v10 = vld [vmem:[%s3312_s0 + $0x3a8] sm:$0xff] }
  0xfa   :  { %v1281_v16 = vmul.f32 %v1005_v15, %v693_v11  ;;  %v1282_v17 = vmul.f32 %v1005_v15, %v694_v12  ;;  %v1000_v18 = vpop.permute.xlu0 %999 }
  0xfb   :  { %v1279_v19 = vmul.f32 %v1000_v18, %v691_v13  ;;  %v1280_v20 = vmul.f32 %v1000_v18, %v692_v14  ;;  %v722_v18 = vld [vmem:[%s3312_s0 + $0x3d8] sm:$0xff] }
  0xfc   :  { %1450 = vst [vmem:[%s3313_s2 + $0x2f0] sm:$0xff] %v1281_v16  ;;  %1451 = vst.msk [vmem:[%s3313_s2 + $0x2f8] sm:$0xff] %vm1356_vm0, %v1282_v17  ;;  %v721_v17 = vld [vmem:[%s3312_s0 + $0x3d0] sm:$0xff] }
  0xfd   :  { %1448 = vst [vmem:[%s3313_s2 + $0x2e0] sm:$0xff] %v1279_v19  ;;  %1449 = vst.msk [vmem:[%s3313_s2 + $0x2e8] sm:$0xff] %vm1356_vm0, %v1280_v20  ;;  %v1015_v25 = vpop.permute.xlu1 %1014  ;;  %v719_v19 = vld [vmem:[%s3312_s0 + $0x3c0] sm:$0xff]  ;;  %v720_v20 = vld [vmem:[%s3312_s0 + $0x3c8] sm:$0xff] }
  0xfe   :  { %v1285_v26 = vmul.f32 %v1015_v25, %v697_v21  ;;  %v1286_v27 = vmul.f32 %v1015_v25, %v698_v22  ;;  %v1010_v28 = vpop.permute.xlu0 %1009 }
  0xff   :  { %v1283_v29 = vmul.f32 %v1010_v28, %v695_v23  ;;  %v1284_v30 = vmul.f32 %v1010_v28, %v696_v24  ;;  %v726_v28 = vld [vmem:[%s3312_s0 + $0x3f8] sm:$0xff] }
 0x100   :  { %1454 = vst [vmem:[%s3313_s2 + $0x310] sm:$0xff] %v1285_v26  ;;  %1455 = vst.msk [vmem:[%s3313_s2 + $0x318] sm:$0xff] %vm1356_vm0, %v1286_v27  ;;  %v725_v27 = vld [vmem:[%s3312_s0 + $0x3f0] sm:$0xff] }
 0x101   :  { %1452 = vst [vmem:[%s3313_s2 + $0x300] sm:$0xff] %v1283_v29  ;;  %1453 = vst.msk [vmem:[%s3313_s2 + $0x308] sm:$0xff] %vm1356_vm0, %v1284_v30  ;;  %v1025_v35 = vpop.permute.xlu1 %1024  ;;  %v723_v29 = vld [vmem:[%s3312_s0 + $0x3e0] sm:$0xff]  ;;  %v724_v30 = vld [vmem:[%s3312_s0 + $0x3e8] sm:$0xff] }
 0x102   :  { %v1289_v36 = vmul.f32 %v1025_v35, %v701_v31  ;;  %v1290_v37 = vmul.f32 %v1025_v35, %v702_v32  ;;  %v1020_v38 = vpop.permute.xlu0 %1019 }
 0x103   :  { %v1287_v39 = vmul.f32 %v1020_v38, %v699_v33  ;;  %v1288_v40 = vmul.f32 %v1020_v38, %v700_v34  ;;  %v730_v38 = vld [vmem:[%s3312_s0 + $0x418] sm:$0xff] }
 0x104   :  { %1458 = vst [vmem:[%s3313_s2 + $0x330] sm:$0xff] %v1289_v36  ;;  %1459 = vst.msk [vmem:[%s3313_s2 + $0x338] sm:$0xff] %vm1356_vm0, %v1290_v37  ;;  %v729_v37 = vld [vmem:[%s3312_s0 + $0x410] sm:$0xff] }
 0x105   :  { %1456 = vst [vmem:[%s3313_s2 + $0x320] sm:$0xff] %v1287_v39  ;;  %1457 = vst.msk [vmem:[%s3313_s2 + $0x328] sm:$0xff] %vm1356_vm0, %v1288_v40  ;;  %v1035_v45 = vpop.permute.xlu1 %1034  ;;  %v727_v39 = vld [vmem:[%s3312_s0 + $0x400] sm:$0xff]  ;;  %v728_v40 = vld [vmem:[%s3312_s0 + $0x408] sm:$0xff] }
 0x106   :  { %v1293_v46 = vmul.f32 %v1035_v45, %v705_v41  ;;  %v1294_v47 = vmul.f32 %v1035_v45, %v706_v42  ;;  %v1030_v48 = vpop.permute.xlu0 %1029 }
 0x107   :  { %v1291_v49 = vmul.f32 %v1030_v48, %v703_v43  ;;  %v1292_v50 = vmul.f32 %v1030_v48, %v704_v44  ;;  %v734_v48 = vld [vmem:[%s3312_s0 + $0x438] sm:$0xff] }
 0x108   :  { %1462 = vst [vmem:[%s3313_s2 + $0x350] sm:$0xff] %v1293_v46  ;;  %1463 = vst.msk [vmem:[%s3313_s2 + $0x358] sm:$0xff] %vm1356_vm0, %v1294_v47  ;;  %v733_v47 = vld [vmem:[%s3312_s0 + $0x430] sm:$0xff] }
 0x109   :  { %1460 = vst [vmem:[%s3313_s2 + $0x340] sm:$0xff] %v1291_v49  ;;  %1461 = vst.msk [vmem:[%s3313_s2 + $0x348] sm:$0xff] %vm1356_vm0, %v1292_v50  ;;  %v1045_v55 = vpop.permute.xlu1 %1044  ;;  %v731_v49 = vld [vmem:[%s3312_s0 + $0x420] sm:$0xff]  ;;  %v732_v50 = vld [vmem:[%s3312_s0 + $0x428] sm:$0xff] }
 0x10a   :  { %v1297_v56 = vmul.f32 %v1045_v55, %v709_v51  ;;  %v1298_v57 = vmul.f32 %v1045_v55, %v710_v52  ;;  %v1040_v58 = vpop.permute.xlu0 %1039 }
 0x10b   :  { %v1295_v59 = vmul.f32 %v1040_v58, %v707_v53  ;;  %v1296_v60 = vmul.f32 %v1040_v58, %v708_v54  ;;  %v738_v58 = vld [vmem:[%s3312_s0 + $0x458] sm:$0xff] }
 0x10c   :  { %1466 = vst [vmem:[%s3313_s2 + $0x370] sm:$0xff] %v1297_v56  ;;  %1467 = vst.msk [vmem:[%s3313_s2 + $0x378] sm:$0xff] %vm1356_vm0, %v1298_v57  ;;  %v737_v57 = vld [vmem:[%s3312_s0 + $0x450] sm:$0xff] }
 0x10d   :  { %1464 = vst [vmem:[%s3313_s2 + $0x360] sm:$0xff] %v1295_v59  ;;  %1465 = vst.msk [vmem:[%s3313_s2 + $0x368] sm:$0xff] %vm1356_vm0, %v1296_v60  ;;  %v1055_v1 = vpop.permute.xlu1 %1054  ;;  %v735_v59 = vld [vmem:[%s3312_s0 + $0x440] sm:$0xff]  ;;  %v736_v60 = vld [vmem:[%s3312_s0 + $0x448] sm:$0xff] }
 0x10e   :  { %v1301_v2 = vmul.f32 %v1055_v1, %v713_v61  ;;  %v1302_v3 = vmul.f32 %v1055_v1, %v714_v62  ;;  %v1050_v4 = vpop.permute.xlu0 %1049 }
 0x10f   :  { %v1299_v5 = vmul.f32 %v1050_v4, %v711_v63  ;;  %v1300_v6 = vmul.f32 %v1050_v4, %v712_v0  ;;  %v742_v4 = vld [vmem:[%s3312_s0 + $0x478] sm:$0xff] }
 0x110   :  { %1470 = vst [vmem:[%s3313_s2 + $0x390] sm:$0xff] %v1301_v2  ;;  %1471 = vst.msk [vmem:[%s3313_s2 + $0x398] sm:$0xff] %vm1356_vm0, %v1302_v3  ;;  %v741_v3 = vld [vmem:[%s3312_s0 + $0x470] sm:$0xff] }
 0x111   :  { %1468 = vst [vmem:[%s3313_s2 + $0x380] sm:$0xff] %v1299_v5  ;;  %1469 = vst.msk [vmem:[%s3313_s2 + $0x388] sm:$0xff] %vm1356_vm0, %v1300_v6  ;;  %v1065_v11 = vpop.permute.xlu1 %1064  ;;  %v739_v5 = vld [vmem:[%s3312_s0 + $0x460] sm:$0xff]  ;;  %v740_v6 = vld [vmem:[%s3312_s0 + $0x468] sm:$0xff] }
 0x112   :  { %v1305_v12 = vmul.f32 %v1065_v11, %v717_v7  ;;  %v1306_v13 = vmul.f32 %v1065_v11, %v718_v8  ;;  %v1060_v14 = vpop.permute.xlu0 %1059 }
 0x113   :  { %v1303_v15 = vmul.f32 %v1060_v14, %v715_v9  ;;  %v1304_v16 = vmul.f32 %v1060_v14, %v716_v10  ;;  %v746_v14 = vld [vmem:[%s3312_s0 + $0x498] sm:$0xff] }
 0x114   :  { %1474 = vst [vmem:[%s3313_s2 + $0x3b0] sm:$0xff] %v1305_v12  ;;  %1475 = vst.msk [vmem:[%s3313_s2 + $0x3b8] sm:$0xff] %vm1356_vm0, %v1306_v13  ;;  %v745_v13 = vld [vmem:[%s3312_s0 + $0x490] sm:$0xff] }
 0x115   :  { %1472 = vst [vmem:[%s3313_s2 + $0x3a0] sm:$0xff] %v1303_v15  ;;  %1473 = vst.msk [vmem:[%s3313_s2 + $0x3a8] sm:$0xff] %vm1356_vm0, %v1304_v16  ;;  %v1075_v21 = vpop.permute.xlu1 %1074  ;;  %v743_v15 = vld [vmem:[%s3312_s0 + $0x480] sm:$0xff]  ;;  %v744_v16 = vld [vmem:[%s3312_s0 + $0x488] sm:$0xff] }
 0x116   :  { %v1309_v22 = vmul.f32 %v1075_v21, %v721_v17  ;;  %v1310_v23 = vmul.f32 %v1075_v21, %v722_v18  ;;  %v1070_v24 = vpop.permute.xlu0 %1069 }
 0x117   :  { %v1307_v25 = vmul.f32 %v1070_v24, %v719_v19  ;;  %v1308_v26 = vmul.f32 %v1070_v24, %v720_v20  ;;  %v750_v24 = vld [vmem:[%s3312_s0 + $0x4b8] sm:$0xff] }
 0x118   :  { %1478 = vst [vmem:[%s3313_s2 + $0x3d0] sm:$0xff] %v1309_v22  ;;  %1479 = vst.msk [vmem:[%s3313_s2 + $0x3d8] sm:$0xff] %vm1356_vm0, %v1310_v23  ;;  %v749_v23 = vld [vmem:[%s3312_s0 + $0x4b0] sm:$0xff] }
 0x119   :  { %1476 = vst [vmem:[%s3313_s2 + $0x3c0] sm:$0xff] %v1307_v25  ;;  %1477 = vst.msk [vmem:[%s3313_s2 + $0x3c8] sm:$0xff] %vm1356_vm0, %v1308_v26  ;;  %v1085_v31 = vpop.permute.xlu1 %1084  ;;  %v747_v25 = vld [vmem:[%s3312_s0 + $0x4a0] sm:$0xff]  ;;  %v748_v26 = vld [vmem:[%s3312_s0 + $0x4a8] sm:$0xff] }
 0x11a   :  { %v1313_v32 = vmul.f32 %v1085_v31, %v725_v27  ;;  %v1314_v33 = vmul.f32 %v1085_v31, %v726_v28  ;;  %v1080_v34 = vpop.permute.xlu0 %1079 }
 0x11b   :  { %v1311_v35 = vmul.f32 %v1080_v34, %v723_v29  ;;  %v1312_v36 = vmul.f32 %v1080_v34, %v724_v30  ;;  %v754_v34 = vld [vmem:[%s3312_s0 + $0x4d8] sm:$0xff] }
 0x11c   :  { %1482 = vst [vmem:[%s3313_s2 + $0x3f0] sm:$0xff] %v1313_v32  ;;  %1483 = vst.msk [vmem:[%s3313_s2 + $0x3f8] sm:$0xff] %vm1356_vm0, %v1314_v33  ;;  %v753_v33 = vld [vmem:[%s3312_s0 + $0x4d0] sm:$0xff] }
 0x11d   :  { %1480 = vst [vmem:[%s3313_s2 + $0x3e0] sm:$0xff] %v1311_v35  ;;  %1481 = vst.msk [vmem:[%s3313_s2 + $0x3e8] sm:$0xff] %vm1356_vm0, %v1312_v36  ;;  %v1095_v41 = vpop.permute.xlu1 %1094  ;;  %v751_v35 = vld [vmem:[%s3312_s0 + $0x4c0] sm:$0xff]  ;;  %v752_v36 = vld [vmem:[%s3312_s0 + $0x4c8] sm:$0xff] }
 0x11e   :  { %v1317_v42 = vmul.f32 %v1095_v41, %v729_v37  ;;  %v1318_v43 = vmul.f32 %v1095_v41, %v730_v38  ;;  %v1090_v44 = vpop.permute.xlu0 %1089 }
 0x11f   :  { %v1315_v45 = vmul.f32 %v1090_v44, %v727_v39  ;;  %v1316_v46 = vmul.f32 %v1090_v44, %v728_v40  ;;  %v758_v44 = vld [vmem:[%s3312_s0 + $0x4f8] sm:$0xff] }
 0x120   :  { %1486 = vst [vmem:[%s3313_s2 + $0x410] sm:$0xff] %v1317_v42  ;;  %1487 = vst.msk [vmem:[%s3313_s2 + $0x418] sm:$0xff] %vm1356_vm0, %v1318_v43  ;;  %v757_v43 = vld [vmem:[%s3312_s0 + $0x4f0] sm:$0xff] }
 0x121   :  { %1484 = vst [vmem:[%s3313_s2 + $0x400] sm:$0xff] %v1315_v45  ;;  %1485 = vst.msk [vmem:[%s3313_s2 + $0x408] sm:$0xff] %vm1356_vm0, %v1316_v46  ;;  %v1105_v51 = vpop.permute.xlu1 %1104  ;;  %v755_v45 = vld [vmem:[%s3312_s0 + $0x4e0] sm:$0xff]  ;;  %v756_v46 = vld [vmem:[%s3312_s0 + $0x4e8] sm:$0xff] }
 0x122   :  { %v1321_v52 = vmul.f32 %v1105_v51, %v733_v47  ;;  %v1322_v53 = vmul.f32 %v1105_v51, %v734_v48  ;;  %v1100_v54 = vpop.permute.xlu0 %1099 }
 0x123   :  { %v1319_v55 = vmul.f32 %v1100_v54, %v731_v49  ;;  %v1320_v56 = vmul.f32 %v1100_v54, %v732_v50  ;;  %v762_v54 = vld [vmem:[%s3312_s0 + $0x518] sm:$0xff] }
 0x124   :  { %1490 = vst [vmem:[%s3313_s2 + $0x430] sm:$0xff] %v1321_v52  ;;  %1491 = vst.msk [vmem:[%s3313_s2 + $0x438] sm:$0xff] %vm1356_vm0, %v1322_v53  ;;  %v761_v53 = vld [vmem:[%s3312_s0 + $0x510] sm:$0xff] }
 0x125   :  { %1488 = vst [vmem:[%s3313_s2 + $0x420] sm:$0xff] %v1319_v55  ;;  %1489 = vst.msk [vmem:[%s3313_s2 + $0x428] sm:$0xff] %vm1356_vm0, %v1320_v56  ;;  %v1115_v61 = vpop.permute.xlu1 %1114  ;;  %v759_v55 = vld [vmem:[%s3312_s0 + $0x500] sm:$0xff]  ;;  %v760_v56 = vld [vmem:[%s3312_s0 + $0x508] sm:$0xff] }
 0x126   :  { %v1325_v62 = vmul.f32 %v1115_v61, %v737_v57  ;;  %v1326_v63 = vmul.f32 %v1115_v61, %v738_v58  ;;  %v1110_v0 = vpop.permute.xlu0 %1109 }
 0x127   :  { %v1323_v1 = vmul.f32 %v1110_v0, %v735_v59  ;;  %v1324_v2 = vmul.f32 %v1110_v0, %v736_v60  ;;  %v766_v0 = vld [vmem:[%s3312_s0 + $0x538] sm:$0xff] }
 0x128   :  { %1494 = vst [vmem:[%s3313_s2 + $0x450] sm:$0xff] %v1325_v62  ;;  %1495 = vst.msk [vmem:[%s3313_s2 + $0x458] sm:$0xff] %vm1356_vm0, %v1326_v63  ;;  %v765_v63 = vld [vmem:[%s3312_s0 + $0x530] sm:$0xff] }
 0x129   :  { %1492 = vst [vmem:[%s3313_s2 + $0x440] sm:$0xff] %v1323_v1  ;;  %1493 = vst.msk [vmem:[%s3313_s2 + $0x448] sm:$0xff] %vm1356_vm0, %v1324_v2  ;;  %v1125_v7 = vpop.permute.xlu1 %1124  ;;  %v763_v1 = vld [vmem:[%s3312_s0 + $0x520] sm:$0xff]  ;;  %v764_v2 = vld [vmem:[%s3312_s0 + $0x528] sm:$0xff] }
 0x12a   :  { %v1329_v8 = vmul.f32 %v1125_v7, %v741_v3  ;;  %v1330_v9 = vmul.f32 %v1125_v7, %v742_v4  ;;  %v1120_v10 = vpop.permute.xlu0 %1119 }
 0x12b   :  { %v1327_v11 = vmul.f32 %v1120_v10, %v739_v5  ;;  %v1328_v12 = vmul.f32 %v1120_v10, %v740_v6 }
 0x12c   :  { %1498 = vst [vmem:[%s3313_s2 + $0x470] sm:$0xff] %v1329_v8  ;;  %1499 = vst.msk [vmem:[%s3313_s2 + $0x478] sm:$0xff] %vm1356_vm0, %v1330_v9 }
 0x12d   :  { %1496 = vst [vmem:[%s3313_s2 + $0x460] sm:$0xff] %v1327_v11  ;;  %1497 = vst.msk [vmem:[%s3313_s2 + $0x468] sm:$0xff] %vm1356_vm0, %v1328_v12  ;;  %v1135_v17 = vpop.permute.xlu1 %1134 }
 0x12e   :  { %v1333_v18 = vmul.f32 %v1135_v17, %v745_v13  ;;  %v1334_v19 = vmul.f32 %v1135_v17, %v746_v14  ;;  %v1130_v20 = vpop.permute.xlu0 %1129 }
 0x12f   :  { %v1331_v21 = vmul.f32 %v1130_v20, %v743_v15  ;;  %v1332_v22 = vmul.f32 %v1130_v20, %v744_v16 }
 0x130   :  { %1502 = vst [vmem:[%s3313_s2 + $0x490] sm:$0xff] %v1333_v18  ;;  %1503 = vst.msk [vmem:[%s3313_s2 + $0x498] sm:$0xff] %vm1356_vm0, %v1334_v19 }
 0x131   :  { %1500 = vst [vmem:[%s3313_s2 + $0x480] sm:$0xff] %v1331_v21  ;;  %1501 = vst.msk [vmem:[%s3313_s2 + $0x488] sm:$0xff] %vm1356_vm0, %v1332_v22  ;;  %v1145_v27 = vpop.permute.xlu1 %1144 }
 0x132   :  { %v1337_v28 = vmul.f32 %v1145_v27, %v749_v23  ;;  %v1338_v29 = vmul.f32 %v1145_v27, %v750_v24  ;;  %v1140_v30 = vpop.permute.xlu0 %1139 }
 0x133   :  { %v1335_v31 = vmul.f32 %v1140_v30, %v747_v25  ;;  %v1336_v32 = vmul.f32 %v1140_v30, %v748_v26 }
 0x134   :  { %1506 = vst [vmem:[%s3313_s2 + $0x4b0] sm:$0xff] %v1337_v28  ;;  %1507 = vst.msk [vmem:[%s3313_s2 + $0x4b8] sm:$0xff] %vm1356_vm0, %v1338_v29 }
 0x135   :  { %1504 = vst [vmem:[%s3313_s2 + $0x4a0] sm:$0xff] %v1335_v31  ;;  %1505 = vst.msk [vmem:[%s3313_s2 + $0x4a8] sm:$0xff] %vm1356_vm0, %v1336_v32  ;;  %v1155_v37 = vpop.permute.xlu1 %1154 }
 0x136   :  { %v1341_v38 = vmul.f32 %v1155_v37, %v753_v33  ;;  %v1342_v39 = vmul.f32 %v1155_v37, %v754_v34  ;;  %v1150_v40 = vpop.permute.xlu0 %1149 }
 0x137   :  { %v1339_v41 = vmul.f32 %v1150_v40, %v751_v35  ;;  %v1340_v42 = vmul.f32 %v1150_v40, %v752_v36 }
 0x138   :  { %1510 = vst [vmem:[%s3313_s2 + $0x4d0] sm:$0xff] %v1341_v38  ;;  %1511 = vst.msk [vmem:[%s3313_s2 + $0x4d8] sm:$0xff] %vm1356_vm0, %v1342_v39 }
 0x139   :  { %1508 = vst [vmem:[%s3313_s2 + $0x4c0] sm:$0xff] %v1339_v41  ;;  %1509 = vst.msk [vmem:[%s3313_s2 + $0x4c8] sm:$0xff] %vm1356_vm0, %v1340_v42  ;;  %v1165_v47 = vpop.permute.xlu1 %1164 }
 0x13a   :  { %v1345_v48 = vmul.f32 %v1165_v47, %v757_v43  ;;  %v1346_v49 = vmul.f32 %v1165_v47, %v758_v44  ;;  %v1160_v50 = vpop.permute.xlu0 %1159 }
 0x13b   :  { %v1343_v51 = vmul.f32 %v1160_v50, %v755_v45  ;;  %v1344_v52 = vmul.f32 %v1160_v50, %v756_v46 }
 0x13c   :  { %1514 = vst [vmem:[%s3313_s2 + $0x4f0] sm:$0xff] %v1345_v48  ;;  %1515 = vst.msk [vmem:[%s3313_s2 + $0x4f8] sm:$0xff] %vm1356_vm0, %v1346_v49 }
 0x13d   :  { %1512 = vst [vmem:[%s3313_s2 + $0x4e0] sm:$0xff] %v1343_v51  ;;  %1513 = vst.msk [vmem:[%s3313_s2 + $0x4e8] sm:$0xff] %vm1356_vm0, %v1344_v52  ;;  %v1175_v57 = vpop.permute.xlu1 %1174 }
 0x13e   :  { %v1349_v58 = vmul.f32 %v1175_v57, %v761_v53  ;;  %v1350_v59 = vmul.f32 %v1175_v57, %v762_v54  ;;  %v1170_v60 = vpop.permute.xlu0 %1169 }
 0x13f   :  { %v1347_v61 = vmul.f32 %v1170_v60, %v759_v55  ;;  %v1348_v62 = vmul.f32 %v1170_v60, %v760_v56 }
 0x140   :  { %1518 = vst [vmem:[%s3313_s2 + $0x510] sm:$0xff] %v1349_v58  ;;  %1519 = vst.msk [vmem:[%s3313_s2 + $0x518] sm:$0xff] %vm1356_vm0, %v1350_v59 }
 0x141   :  { %1516 = vst [vmem:[%s3313_s2 + $0x500] sm:$0xff] %v1347_v61  ;;  %1517 = vst.msk [vmem:[%s3313_s2 + $0x508] sm:$0xff] %vm1356_vm0, %v1348_v62  ;;  %v1185_v3 = vpop.permute.xlu1 %1184 }
 0x142   :  { %v1353_v4 = vmul.f32 %v1185_v3, %v765_v63  ;;  %v1354_v5 = vmul.f32 %v1185_v3, %v766_v0  ;;  %v1180_v6 = vpop.permute.xlu0 %1179 }
 0x143   :  { %v1351_v7 = vmul.f32 %v1180_v6, %v763_v1  ;;  %v1352_v8 = vmul.f32 %v1180_v6, %v764_v2 }
 0x144   :  { %1522 = vst [vmem:[%s3313_s2 + $0x530] sm:$0xff] %v1353_v4  ;;  %1523 = vst.msk [vmem:[%s3313_s2 + $0x538] sm:$0xff] %vm1356_vm0, %v1354_v5 }
 0x145   :  { %1520 = vst [vmem:[%s3313_s2 + $0x520] sm:$0xff] %v1351_v7  ;;  %1521 = vst.msk [vmem:[%s3313_s2 + $0x528] sm:$0xff] %vm1356_vm0, %v1352_v8 }

</bundles_post_ra>
